<compile_context>
chip_gen: v5e
topology: v5e:2x2
jax: 0.10.0
libtpu: 0.0.40
codegen_flags: <defaults>
</compile_context>

<pallas_src>
import jax
import jax.numpy as jnp
from jax.experimental import pallas as pl
from jax.experimental.pallas import tpu as pltpu


# ----------------------------------------------------------------------------
# Kernel
# ----------------------------------------------------------------------------
def expert_kernel(x_ref, w13t_ref, w2t_ref, o_ref, acc_ref):
    # x_ref   : (tm, dim)     bf16  (resident across the inter axis)
    # w13t_ref: (dim, 2*tn)   bf16  [w1^T slice j | w3^T slice j]
    # w2t_ref : (tn, dim)     bf16  slice j of w2^T
    # o_ref   : (tm, dim)     bf16  (same block for every j -> reduction output)
    # acc_ref : (tm, dim)     f32   VMEM scratch accumulator
    j = pl.program_id(1)
    tn = w2t_ref.shape[0]

    x = x_ref[...]
    # Single fused MXU launch for both projections of this inter-slice.
    h = jnp.dot(x, w13t_ref[...], preferred_element_type=jnp.float32)  # (tm, 2*tn)
    h1 = h[:, :tn]       # w1(x) slice (lane-aligned: tn % 128 == 0)
    h3 = h[:, tn:]       # w3(x) slice

    # SiLU gate fully in f32 (sigmoid -> EUP slot), one cast to bf16 for the
    # second GEMM.  VPU/EUP cost is far below the MXU cycles per step.
    gated = (h1 * jax.nn.sigmoid(h1)) * h3
    partial = jnp.dot(
        gated.astype(jnp.bfloat16), w2t_ref[...],
        preferred_element_type=jnp.float32,
    )

    # No zero-fill + read-modify-write on the first step: write, then add.
    @pl.when(j == 0)
    def _():
        acc_ref[...] = partial

    @pl.when(j > 0)
    def _():
        acc_ref[...] += partial

    @pl.when(j == pl.num_programs(1) - 1)
    def _():
        o_ref[...] = acc_ref[...].astype(o_ref.dtype)


# ----------------------------------------------------------------------------
# One-time weight re-layout (init time; NOT per forward pass)
# ----------------------------------------------------------------------------
def prepare_expert_weights(w1, w2, w3, *, tn):
    """Re-layout PyTorch-style weights for the kernel.

    w1, w3 : [inter, dim]  ->  w13t : [dim, 2*inter]
             columns are interleaved in tn-wide blocks:
             [w1^T blk0 | w3^T blk0 | w1^T blk1 | w3^T blk1 | ...]
    w2     : [dim, inter]  ->  w2t  : [inter, dim]

    `tn` must equal the inter-tile used at call time (it fixes the interleave
    granularity).  Do this ONCE and keep the results.
    """
    w1t = jnp.asarray(w1).T   # [dim, inter]
    w3t = jnp.asarray(w3).T   # [dim, inter]
    dim, inter = w1t.shape
    assert inter % tn == 0, f"inter={inter} must be divisible by tn={tn}"
    nblk = inter // tn
    w13t = jnp.stack(
        [w1t.reshape(dim, nblk, tn), w3t.reshape(dim, nblk, tn)], axis=2
    ).reshape(dim, 2 * inter)
    w2t = jnp.asarray(w2).T   # [inter, dim]
    return w13t, w2t


# ----------------------------------------------------------------------------
# Generation-aware tile selection
# ----------------------------------------------------------------------------
def _physical_vmem_bytes():
    try:
        return int(pltpu.get_tpu_info().vmem_capacity_bytes)
    except Exception:
        return 128 << 20  # v5e/v6e default


def default_tiles():
    """Pick (tm, tn) for the current TPU generation (large-T production sizes)."""
    vmem = _physical_vmem_bytes()
    try:
        kind = jax.devices()[0].device_kind.lower()
    except Exception:
        kind = ""
    if vmem <= (96 << 20):
        # v7x-class: 64 MiB VMEM per TensorCore. tn stays 256 (full MXU width);
        # tm=256 (~42 MiB buffers) -- callers may bump to 384 when T % 384 == 0.
        return 256, 256
    if "v5" in kind:
        # v5e: ridge ~240 F/B -> tm=256 reaches the balance point.
        return 256, 512
    # v6e: ridge ~640 F/B -> tm=512 halves weight traffic vs 256 (~84 MiB bufs).
    return 512, 512


def _pick_token_tile(T, tm):
    """Clamp tm to T, keep T % tm == 0 and (when possible) T // tm >= 2 so the
    parallel token axis spans both v7x TensorCores."""
    tm = min(tm, T)
    while tm > 16 and (T % tm != 0 or T // tm < 2) and T >= 32:
        tm //= 2
    if T % tm != 0:
        tm = T  # last resort: single token tile
    return tm


# ----------------------------------------------------------------------------
# Forward wrapper
# ----------------------------------------------------------------------------
def expert_forward(x, w13t, w2t, *, tm=None, tn=None):
    """Gated-MLP expert forward.

    x    : [T, dim]        bf16  (token-major, features on lanes)
    w13t : [dim, 2*inter]  bf16  (fused/interleaved w1^T|w3^T, see prepare_*)
    w2t  : [inter, dim]    bf16  (pre-transposed w2)
    tm   : token tile (multiple of 16).  None -> generation default.
    tn   : inter tile (multiple of 128). MUST match the tn used in
           prepare_expert_weights.  None -> generation default.
    """
    T, dim = x.shape
    inter = w2t.shape[0]
    assert w13t.shape == (dim, 2 * inter)

    d_tm, d_tn = default_tiles()
    if tn is None:
        tn = d_tn
    if tm is None:
        tm = d_tm
    tn = min(tn, inter)
    tm = _pick_token_tile(T, tm)

    assert T % tm == 0, f"T={T} must be divisible by tm={tm}"
    assert inter % tn == 0, f"inter={inter} must be divisible by tn={tn}"
    assert dim % 128 == 0 and tn % 128 == 0 and tm % 16 == 0

    grid = (T // tm, inter // tn)

    # VMEM budget: double-buffered bf16 tiles + single f32 accumulator.
    b = 2  # bf16 bytes
    vmem_needed = (
        2 * b * (tm * dim          # x tile
                 + tm * dim        # out tile
                 + 2 * dim * tn    # fused w1|w3 tile
                 + tn * dim)       # w2^T tile
        + 4 * tm * dim             # f32 accumulator scratch
    )
    phys_vmem = _physical_vmem_bytes()
    vmem_limit = min(int(vmem_needed * 1.25) + (8 << 20), phys_vmem - (8 << 20))

    # True HBM traffic: x read + out write once; weights re-streamed per
    # token tile (T // tm times).
    n_token_tiles = T // tm
    cost = pl.CostEstimate(
        flops=6 * T * dim * inter,            # three GEMMs
        transcendentals=T * inter,            # sigmoid
        bytes_accessed=b * (2 * T * dim) + n_token_tiles * b * (3 * dim * inter),
    )

    return pl.pallas_call(
        expert_kernel,
        out_shape=jax.ShapeDtypeStruct((T, dim), x.dtype),
        grid_spec=pltpu.PrefetchScalarGridSpec(
            num_scalar_prefetch=0,
            grid=grid,
            in_specs=[
                pl.BlockSpec((tm, dim), lambda i, j: (i, 0)),        # x tile
                pl.BlockSpec((dim, 2 * tn), lambda i, j: (0, j)),    # w1|w3 slice
                pl.BlockSpec((tn, dim), lambda i, j: (j, 0)),        # w2^T slice
            ],
            out_specs=pl.BlockSpec((tm, dim), lambda i, j: (i, 0)),
            scratch_shapes=[pltpu.VMEM((tm, dim), jnp.float32)],
        ),
        compiler_params=pltpu.CompilerParams(
            dimension_semantics=("parallel", "arbitrary"),
            vmem_limit_bytes=vmem_limit,
        ),
        cost_estimate=cost,
    )(x, w13t, w2t)


# ----------------------------------------------------------------------------
# Plain-JAX reference (PyTorch-layout weights)
# ----------------------------------------------------------------------------
def expert_reference(x, w1, w2, w3):
    h1 = jnp.dot(x, w1.T, preferred_element_type=jnp.float32)
    h3 = jnp.dot(x, w3.T, preferred_element_type=jnp.float32)
    gated = (h1 * jax.nn.sigmoid(h1) * h3).astype(jnp.bfloat16)
    return jnp.dot(gated, w2.T, preferred_element_type=jnp.float32).astype(jnp.bfloat16)


if __name__ == "__main__":
    # Small, lane-aligned shapes consistent with the module; tm/tn chosen so
    # the grid is (2, 2): both the parallel token axis and the inter
    # reduction are exercised.
    T, dim, inter_dim = 256, 256, 512
    tm, tn = 128, 256

    key = jax.random.PRNGKey(0)
    kx, k1, k2, k3 = jax.random.split(key, 4)

    # Synthetic deterministic params (module __init__ only defines shapes):
    #   w1: [inter_dim, dim], w2: [dim, inter_dim], w3: [inter_dim, dim]
    scale1 = 1.0 / jnp.sqrt(dim)
    scale2 = 1.0 / jnp.sqrt(inter_dim)
    x = jax.random.normal(kx, (T, dim), dtype=jnp.float32).astype(jnp.bfloat16)
    w1 = (jax.random.normal(k1, (inter_dim, dim), dtype=jnp.float32) * scale1).astype(jnp.bfloat16)
    w2 = (jax.random.normal(k2, (dim, inter_dim), dtype=jnp.float32) * scale2).astype(jnp.bfloat16)
    w3 = (jax.random.normal(k3, (inter_dim, dim), dtype=jnp.float32) * scale1).astype(jnp.bfloat16)

    # One-time weight re-layout (hoisted out of the forward path).
    w13t, w2t = prepare_expert_weights(w1, w2, w3, tn=tn)
    w13t, w2t = jax.block_until_ready((w13t, w2t))

    out = expert_forward(x, w13t, w2t, tm=tm, tn=tn)
    out = jax.block_until_ready(out)

    ref = expert_reference(x, w1, w2, w3)
    assert out.shape == (T, dim) and out.dtype == jnp.bfloat16
    assert jnp.allclose(out.astype(jnp.float32), ref.astype(jnp.float32),
                        rtol=2e-2, atol=2e-2), "mismatch vs reference"

    print("KERNEL_OK")
</pallas_src>

<mosaic_0001>
module attributes {stable_mosaic.version = 11 : i64} {
  func.func @expert_kernel(%arg0: i32, %arg1: i32, %arg2: memref<128x256xbf16, #tpu.memory_space<vmem>>, %arg3: memref<256x512xbf16, #tpu.memory_space<vmem>>, %arg4: memref<256x256xbf16, #tpu.memory_space<vmem>>, %arg5: memref<128x256xbf16, #tpu.memory_space<vmem>>, %arg6: memref<128x256xf32, #tpu.memory_space<vmem>>) attributes {dimension_semantics = [#tpu.dimension_semantics<parallel>, #tpu.dimension_semantics<arbitrary>], iteration_bounds = array<i64: 2, 2>, scalar_prefetch = 0 : i64, scratch_operands = 1 : i64, tpu.core_type = #tpu.core_type<tc>, window_params = [{transform_indices = @transform_0, window_bounds = array<i64: 128, 256>}, {transform_indices = @transform_1, window_bounds = array<i64: 256, 512>}, {transform_indices = @transform_2, window_bounds = array<i64: 256, 256>}, {transform_indices = @transform_3, window_bounds = array<i64: 128, 256>}]} {
    %c0 = arith.constant 0 : index
    %c0_0 = arith.constant 0 : index
    %0 = vector.load %arg2[%c0, %c0_0] : memref<128x256xbf16, #tpu.memory_space<vmem>>, vector<128x256xbf16>
    %c0_1 = arith.constant 0 : index
    %c0_2 = arith.constant 0 : index
    %1 = vector.load %arg3[%c0_1, %c0_2] : memref<256x512xbf16, #tpu.memory_space<vmem>>, vector<256x512xbf16>
    %cst = arith.constant dense<0.000000e+00> : vector<128x512xf32>
    %2 = tpu.matmul %0, %1, %cst {dimension_numbers = #tpu.dot_dimension_numbers<[1], [0], [0], [1], [0, 0, 1, 1], [], []>} : vector<128x256xbf16>, vector<256x512xbf16>, vector<128x512xf32> -> vector<128x512xf32>
    %3 = vector.extract_strided_slice %2 {offsets = [0, 0], sizes = [128, 256], strides = [1, 1]} : vector<128x512xf32> to vector<128x256xf32>
    %4 = vector.extract_strided_slice %2 {offsets = [0, 256], sizes = [128, 256], strides = [1, 1]} : vector<128x512xf32> to vector<128x256xf32>
    %5 = arith.negf %3 : vector<128x256xf32>
    %6 = math.exp %5 : vector<128x256xf32>
    %cst_3 = arith.constant 1.000000e+00 : f32
    %7 = vector.broadcast %cst_3 : f32 to vector<128x256xf32>
    %8 = arith.addf %7, %6 : vector<128x256xf32>
    %9 = arith.divf %7, %8 : vector<128x256xf32>
    %10 = arith.mulf %3, %9 : vector<128x256xf32>
    %11 = arith.mulf %10, %4 : vector<128x256xf32>
    %12 = arith.truncf %11 : vector<128x256xf32> to vector<128x256xbf16>
    %c0_4 = arith.constant 0 : index
    %c0_5 = arith.constant 0 : index
    %13 = vector.load %arg4[%c0_4, %c0_5] : memref<256x256xbf16, #tpu.memory_space<vmem>>, vector<256x256xbf16>
    %cst_6 = arith.constant dense<0.000000e+00> : vector<128x256xf32>
    %14 = tpu.matmul %12, %13, %cst_6 {dimension_numbers = #tpu.dot_dimension_numbers<[1], [0], [0], [1], [0, 0, 1, 1], [], []>} : vector<128x256xbf16>, vector<256x256xbf16>, vector<128x256xf32> -> vector<128x256xf32>
    %c0_i32 = arith.constant 0 : i32
    %15 = arith.cmpi eq, %arg1, %c0_i32 : i32
    %16 = arith.extui %15 : i1 to i32
    %c0_i32_7 = arith.constant 0 : i32
    %17 = arith.cmpi ne, %16, %c0_i32_7 : i32
    scf.if %17 {
      %c0_11 = arith.constant 0 : index
      %c0_12 = arith.constant 0 : index
      %24 = vector.load %arg6[%c0_11, %c0_12] : memref<128x256xf32, #tpu.memory_space<vmem>>, vector<128x256xf32>
      tpu.vector_store %arg6[%c0_11, %c0_12], %14 {strides = array<i32>} : memref<128x256xf32, #tpu.memory_space<vmem>>, vector<128x256xf32>,
    } else {
    }
    %c0_i32_8 = arith.constant 0 : i32
    %18 = arith.cmpi sgt, %arg1, %c0_i32_8 : i32
    %19 = arith.extui %18 : i1 to i32
    %c0_i32_9 = arith.constant 0 : i32
    %20 = arith.cmpi ne, %19, %c0_i32_9 : i32
    scf.if %20 {
      %c0_11 = arith.constant 0 : index
      %c0_12 = arith.constant 0 : index
      %24 = vector.load %arg6[%c0_11, %c0_12] : memref<128x256xf32, #tpu.memory_space<vmem>>, vector<128x256xf32>
      %25 = arith.addf %24, %14 : vector<128x256xf32>
      %c0_13 = arith.constant 0 : index
      %c0_14 = arith.constant 0 : index
      %26 = vector.load %arg6[%c0_13, %c0_14] : memref<128x256xf32, #tpu.memory_space<vmem>>, vector<128x256xf32>
      tpu.vector_store %arg6[%c0_13, %c0_14], %25 {strides = array<i32>} : memref<128x256xf32, #tpu.memory_space<vmem>>, vector<128x256xf32>,
    } else {
    }
    %c1_i32 = arith.constant 1 : i32
    %21 = arith.cmpi eq, %arg1, %c1_i32 : i32
    %22 = arith.extui %21 : i1 to i32
    %c0_i32_10 = arith.constant 0 : i32
    %23 = arith.cmpi ne, %22, %c0_i32_10 : i32
    scf.if %23 {
      %c0_11 = arith.constant 0 : index
      %c0_12 = arith.constant 0 : index
      %24 = vector.load %arg6[%c0_11, %c0_12] : memref<128x256xf32, #tpu.memory_space<vmem>>, vector<128x256xf32>
      %25 = arith.truncf %24 : vector<128x256xf32> to vector<128x256xbf16>
      %c0_13 = arith.constant 0 : index
      %c0_14 = arith.constant 0 : index
      %26 = vector.load %arg5[%c0_13, %c0_14] : memref<128x256xbf16, #tpu.memory_space<vmem>>, vector<128x256xbf16>
      tpu.vector_store %arg5[%c0_13, %c0_14], %25 {strides = array<i32>} : memref<128x256xbf16, #tpu.memory_space<vmem>>, vector<128x256xbf16>,
    } else {
    }
    return
  }
  func.func @transform_0(%arg0: i32, %arg1: i32) -> (i32, i32) {
    %c0_i32 = arith.constant 0 : i32
    %c0_i32_0 = arith.constant 0 : i32
    return %arg0, %c0_i32 : i32, i32
  }
  func.func @transform_1(%arg0: i32, %arg1: i32) -> (i32, i32) {
    %c0_i32 = arith.constant 0 : i32
    %c0_i32_0 = arith.constant 0 : i32
    return %c0_i32, %arg1 : i32, i32
  }
  func.func @transform_2(%arg0: i32, %arg1: i32) -> (i32, i32) {
    %c0_i32 = arith.constant 0 : i32
    %c0_i32_0 = arith.constant 0 : i32
    return %arg1, %c0_i32 : i32, i32
  }
  func.func @transform_3(%arg0: i32, %arg1: i32) -> (i32, i32) {
    %c0_i32 = arith.constant 0 : i32
    %c0_i32_0 = arith.constant 0 : i32
    return %arg0, %c0_i32 : i32, i32
  }
}

</mosaic_0001>

<bundles_post_ra>
// kernel: tpu_custom_call.1
= control target key start
LH: loop header
LB: loop body
LE: loop exit
PB: predicated region body
PF: predicated region fallthrough
CT: control target
= control target key end

     0   :  { %s5639_s0 = inlined_call_operand.hbm [shape: bf16[256,256], index: 0, kind: input, shape index: {}]   ;;  %s5640_s1 = inlined_call_operand.hbm [shape: bf16[256,1024], index: 1, kind: input, shape index: {}]   ;;  %s5641_s2 = inlined_call_operand.hbm [shape: bf16[512,256], index: 2, kind: input, shape index: {}]   ;;  %s5642_s3 = inlined_call_operand.hbm [shape: bf16[256,256], index: 3, kind: output, shape index: {}]  }
   0x1   :  { %5666 = sst [smem:[#allocation51_spill]] %s5640_s1 }
   0x2   :  { %5667 = sst [smem:[#allocation52_spill]] %s5642_s3 }
   0x3   :  { %8 = vsyncpa [#allocation4], 0 }
   0x4   :  { %10 = vsyncpa [#allocation4 + $0x1], 0 }
   0x5   :  { %11 = vsyncpa [#allocation7], 0 }
   0x6   :  { %13 = vsyncpa [#allocation7 + $0x1], 0 }
   0x7   :  { %14 = vsyncpa [#allocation5], 0 }
   0x8   :  { %16 = vsyncpa [#allocation5 + $0x1], 0  ;;  %s3706_s12 = smov 0   ;;  %s3708_s13 = smov 0  }
   0x9   :  { %s3710_s14 = smov 0   ;;  %s3712_s15 = smov 0  }
   0xa   :  { %s3714_s16 = smov 0   ;;  %s3716_s17 = smov 0  }
   0xb   :  { %s3718_s18 = smov 0   ;;  %s3720_s19 = smov 0  }
   0xc   :  { %s3722_s20 = smov 0   ;;  %s3724_s21 = smov 0  }
   0xd   :  { %s3726_s22 = smov 0  }
   0xe LB: > { %5668 = sst [smem:[#allocation13_spill]] %s3649_s15  ;;  %s31_s23 = sadd.s32 1, %s3669_s20  ;;  %s3677_s22 = sphi %s3726_s22, %s22_s22   ;;  %s3673_s21 = sphi %s3724_s21, %s5850_s21   ;;  %s3669_s20 = sphi %s3722_s20, %s5857_s20   ;;  %s3665_s19 = sphi %s3720_s19, %s5848_s19   ;;  %s3661_s18 = sphi %s3718_s18, %s5856_s18   ;;  %s3657_s17 = sphi %s3716_s17, %s5847_s17   ;;  %s3653_s16 = sphi %s3714_s16, %s5855_s16   ;;  %s3649_s15 = sphi %s3712_s15, %s5854_s15   ;;  %s3645_s14 = sphi %s3710_s14, %s5853_s14   ;;  %s3641_s13 = sphi %s3708_s13, %s5852_s13   ;;  %s3637_s12 = sphi %s3706_s12, %s5851_s12  }
   0xf   : > { %5669 = sst [smem:[#allocation14_spill]] %s3657_s17  ;;  %p49_p0 = scmp.eq.s32.totalorder %s3677_s22, 0 }
  0x10   : > { %5670 = sst [smem:[#allocation15_spill]] %s3665_s19  ;;  %p3763_p1 = scmp.ge.s32.totalorder %s31_s23, 2 }
  0x11   : > { %5671 = sst [smem:[#allocation16_spill]] %s3673_s21  ;;  %s67_s25 = sadd.s32 1, %s3645_s14 }
  0x12   : > { %p74_p2 = scmp.ne.s32.totalorder %s3645_s14, %s3641_s13  ;;  %p80_p3 = scmp.ne.s32.totalorder %s3641_s13, %s3637_s12 }
  0x13   : > { %s5859_s23 = smov (%p3763_p1, %s31_s23), 0  ;;  %p3236_p5 = scmp.lt.s32.totalorder %s3677_s22, 4 }
  0x14   : > { %5673 = sst [smem:[#allocation17_spill]] %s5859_s23  ;;  %p3778_p4 = por %p74_p2, %p49_p0 }
  0x15   : > { %s64_s27 = ssub.s32 %s3669_s20, %s5859_s23  ;;  %s179_s28 = sand.u32 1, %s3677_s22  }
  0x16   : > { %p65_p6 = scmp.eq.s32.totalorder %s64_s27, 0  ;;  %s5643_s29 = sand.u32 1, %s3645_s14  }
  0x17   : > { %s2594_s4 = sshll.u32 %s5643_s29, 9  ;;  %s3097_s5 = sshll.u32 %s3669_s20, 4 }
  0x18   : > { %s3788_s30 = scalar_select %p65_p6, %s3645_s14, %s67_s25  }
  0x19   : > { %s5676_s1 = sld [smem:[#allocation51_spill]]  ;;  %s183_s10 = scalar_lea.vmem [#allocation6], %s2594_s4 }
  0x1a   : > { %5675 = sst [smem:[#allocation18_spill]] %s3788_s30  ;;  %s191_s11 = sshll.u32 %s183_s10, 4  ;;  %s192_s11 = int_to_ptr.vmem [resolvable:$true] %s191_s11 }
  0x1b   : > { %p3800_p7 = pnand %p3236_p5, %p3778_p4  ;;  %p2601_p8 = scmp.ge.s32.totalorder %s3677_s22, 1 }
  0x1c   : > { %s3805_s27 = scalar_lea.sflag [#allocation7], %s179_s28  ;;  %s3679_s4 = smov 512  }
  0x1d   : > { %s3681_s6 = smov 16   ;;  %p222_p9 = scmp.lt.s32.totalorder %s3677_s22, 5 }
  0x1e   : > { %s3816_s7 = sadd.s32 4294967295, %s3677_s22   ;;  %s2587_s28 = sadd.s32 4294967294, %s3677_s22  }
  0x1f   : > { %s188_s8 = scalar_lea.hbm %s5676_s1, %s3097_s5  ;;  %s3680_s5 = smov 256  }
  0x20   : > { %s189_s9 = sshll.u32 %s188_s8, 4  ;;  %p3811_p10 = pnand %p2601_p8, %p222_p9  ;;  %s190_s9 = int_to_ptr.hbm [resolvable:$true] %s189_s9 }
  0x21   : > { %3228 = dma.hbm_to_vmem [thread:$0]  (!%p3800_p7), %s190_s9, 8192, %s192_s11, %s3805_s27, %s3679_s4, %s3680_s5, %s3681_s6  }
  0x22   : > { %s34_s8 = sadd.s32 1, %s3673_s21  ;;  %s41_s10 = sadd.s32 1, %s3657_s17 }
  0x23   : > { %s5861_s8 = smov (!%p3763_p1, %s34_s8), %s3673_s21  ;;  %p48_p11 = scmp.ne.s32.totalorder %s3657_s17, %s3653_s16 }
  0x24   : > { %p54_p12 = scmp.ne.s32.totalorder %s3653_s16, %s3649_s15  ;;  %p36_p13 = scmp.ge.s32.totalorder %s5861_s8, 2 }
  0x25   : > { %p55_p2 = scmp.eq.s32.totalorder %s3816_s7, 0  ;;  %p3831_p4 = por %p49_p0, %p48_p11 }
  0x26   : > { %p130_p6 = scmp.eq.s32.totalorder %s3816_s7, 3  ;;  %s5863_s8 = smov (%p36_p13, %s5861_s8), 0 }
  0x27   : > { %5680 = sst [smem:[#allocation19_spill]] %s5863_s8  ;;  %p3841_p8 = por %p55_p2, %p54_p12 }
  0x28   : > { %p3848_p1 = por %p80_p3, %p55_p2  ;;  %s38_s4 = ssub.s32 %s3673_s21, %s5863_s8 }
  0x29   : > { %p3854_p0 = por %p130_p6, %p48_p11  ;;  %p39_p9 = scmp.eq.s32.totalorder %s38_s4, 0 }
  0x2a   : > { %p136_p13 = scmp.eq.s32.totalorder %s2587_s28, 3  ;;  %s156_s6 = sand.u32 1, %s3657_s17  }
  0x2b   : > { %s5683_s5 = scalar_select %p3854_p0, 1, 0 }
  0x2c   : > { %s3096_s29 = sshll.u32 %s3673_s21, 7  ;;  %p3866_p3 = por %p136_p13, %p54_p12 }
  0x2d   : > { %5684 = sst [smem:[#allocation20_spill]] %s5683_s5  ;;  %s2590_s23 = sshll.u32 %s156_s6, 7 }
  0x2e   : > { %s3861_s1 = scalar_select %p39_p9, %s3657_s17, %s41_s10  }
  0x2f   : > { %s5686_s12 = scalar_select %p3866_p3, 1, 0 }
  0x30   : > { %5685 = sst [smem:[#allocation21_spill]] %s3861_s1  ;;  %s166_s3 = scalar_lea.hbm %s5639_s0, %s3096_s29 }
  0x31   : > { %5687 = sst [smem:[#allocation22_spill]] %s5686_s12  ;;  %s167_s19 = sshll.u32 %s166_s3, 4  ;;  %s168_s19 = int_to_ptr.hbm [resolvable:$true] %s167_s19 }
  0x32   : > { %s160_s5 = scalar_lea.vmem [#allocation3], %s2590_s23  ;;  %p3223_p11 = pnand %p3236_p5, %p3831_p4 }
  0x33   : > { %s169_s28 = sshll.u32 %s160_s5, 4  ;;  %s5688_s10 = sand.u32 1, %s3645_s14   ;;  %s170_s28 = int_to_ptr.vmem [resolvable:$true] %s169_s28 }
  0x34   : > { %s2597_s4 = sshll.u32 %s5688_s10, 8  ;;  %s157_s21 = scalar_lea.sflag [#allocation4], %s156_s6 }
  0x35   : > { %s3682_s1 = smov 128   ;;  %s3683_s17 = smov 8  }
  0x36   : > { %3225 = dma.hbm_to_vmem [thread:$0]  (!%p3223_p11), %s168_s19, 2048, %s170_s28, %s157_s21, %s3682_s1, %s3682_s1, %s3683_s17  }
  0x37   : > { %s3099_s12 = sshll.u32 %s3669_s20, 8  ;;  %s205_s29 = scalar_lea.vmem [#allocation8], %s2597_s4 }
  0x38   : > { %s211_s3 = scalar_lea.hbm %s5641_s2, %s3099_s12  ;;  %s214_s23 = sshll.u32 %s205_s29, 4  ;;  %s215_s23 = int_to_ptr.vmem [resolvable:$true] %s214_s23 }
  0x39   : > { %s212_s8 = sshll.u32 %s211_s3, 4  ;;  %226 = sbr.rel (%p3811_p10) target bundleno = 769 (0x301), region = 32  ;;  %s213_s8 = int_to_ptr.hbm [resolvable:$true] %s212_s8 }
  0x3a   : > { %3231 = dma.hbm_to_vmem [thread:$0]  (!%p3800_p7), %s213_s8, 4096, %s215_s23, %s3805_s27, %s3682_s1, %s3682_s1, %s3683_s17  }
  0x3e   : > { %s3889_s9 = sand.u32 1, %s3653_s16  }
  0x3f   : > { %s2602_s19 = sshll.u32 %s3889_s9, 7  ;;  %s229_s15 = scalar_lea.sflag [#allocation4], %s3889_s9 }
  0x40   : > { %s3895_s21 = scalar_lea.vmem [#allocation3], %s2602_s19 }
  0x41   : > { %3624 = dma.done.wait (%p3841_p8), %s229_s15, 2048  }
  0x42   : > { %3626 = vsyncadd (%p3841_p8), %s229_s15, 4294965248  ;;  %s238_s1 = sand.u32 1, %s3816_s7   ;;  %s240_s17 = sand.u32 1, %s3641_s13  }
  0x43   : > { %s2603_s25 = sshll.u32 %s240_s17, 9  ;;  %s239_s27 = scalar_lea.sflag [#allocation7], %s238_s1 }
  0x44   : > { %s3905_s26 = scalar_lea.vmem [#allocation6], %s2603_s25 }
  0x45   : > { %3628 = dma.done.wait (%p3848_p1), %s239_s27, 12288  }
  0x46   : > { %3630 = vsyncadd (%p3848_p1), %s239_s27, 4294955008  ;;  %v2784_v0 = vld [vmem:[%s3905_s26 + $0xe0] sm:$0xf]  ;;  %v3146_v1 = vld [vmem:[%s3905_s26 + $0xec] sm:$0xf0]  ;;  %s2604_s7 = sshll.u32 %s240_s17, 8 }
  0x47   : > { %v2912_v2 = vld [vmem:[%s3905_s26 + $0x1e0] sm:$0xf]  ;;  %v2785_v3 = vor.u32 %v3146_v1, %v2784_v0  ;;  %v3178_v4 = vld [vmem:[%s3905_s26 + $0x1ec] sm:$0xf0]  ;;  %v3144_v5 = vld [vmem:[%s3905_s26 + $0xe4] sm:$0xf] }
  0x48   : > { %v2786_v6 = vld [vmem:[%s3905_s26 + $0xf0] sm:$0xf0]  ;;  %v2913_v7 = vor.u32 %v3178_v4, %v2912_v2  ;;  %v3176_v9 = vld [vmem:[%s3905_s26 + $0x1e4] sm:$0xf]  ;;  %v2768_v11 = vld [vmem:[%s3905_s26 + $0xc0] sm:$0xf] }
  0x49   : > { %v2789_v8 = vor.u32 %v3144_v5, %v2786_v6  ;;  %v2914_v10 = vld [vmem:[%s3905_s26 + $0x1f0] sm:$0xf0]  ;;  %770 = vmatpush.bf16.msra.mxu0 %v2785_v3  ;;  %v3142_v13 = vld [vmem:[%s3905_s26 + $0xcc] sm:$0xf0]  ;;  %v2896_v14 = vld [vmem:[%s3905_s26 + $0x1c0] sm:$0xf] }
  0x4a   : > { %v2917_v12 = vor.u32 %v3176_v9, %v2914_v10  ;;  %v3174_v15 = vld [vmem:[%s3905_s26 + $0x1cc] sm:$0xf0]  ;;  %819 = vmatpush.bf16.msra.mxu1 %v2913_v7  ;;  %v2769_v16 = vor.u32 %v3142_v13, %v2768_v11  ;;  %v3140_v18 = vld [vmem:[%s3905_s26 + $0xc4] sm:$0xf]  ;;  %v2770_v19 = vld [vmem:[%s3905_s26 + $0xd0] sm:$0xf0] }
  0x4b   : > { %868 = vmatpush.bf16.msra.mxu2 %v2789_v8  ;;  %v2897_v17 = vor.u32 %v3174_v15, %v2896_v14  ;;  %v3172_v20 = vld [vmem:[%s3905_s26 + $0x1c4] sm:$0xf]  ;;  %v2773_v21 = vor.u32 %v3140_v18, %v2770_v19  ;;  %v2898_v22 = vld [vmem:[%s3905_s26 + $0x1d0] sm:$0xf0]  ;;  %v2752_v23 = vld [vmem:[%s3905_s26 + $0xa0] sm:$0xf] }
  0x4c   : > { %917 = vmatpush.bf16.msra.mxu3 %v2917_v12  ;;  %v3138_v24 = vld [vmem:[%s3905_s26 + $0xac] sm:$0xf0]  ;;  %v2901_v25 = vor.u32 %v3172_v20, %v2898_v22  ;;  %v2880_v26 = vld [vmem:[%s3905_s26 + $0x1a0] sm:$0xf]  ;;  %v3136_v28 = vld [vmem:[%s3905_s26 + $0xa4] sm:$0xf] }
  0x4d   : > { %v3170_v27 = vld [vmem:[%s3905_s26 + $0x1ac] sm:$0xf0]  ;;  %771 = vmatpush.bf16.msra.mxu0 %v2769_v16  ;;  %v2753_v29 = vor.u32 %v3138_v24, %v2752_v23  ;;  %v2754_v30 = vld [vmem:[%s3905_s26 + $0xb0] sm:$0xf0]  ;;  %v3168_v31 = vld [vmem:[%s3905_s26 + $0x1a4] sm:$0xf] }
  0x4e   : > { %v2882_v32 = vld [vmem:[%s3905_s26 + $0x1b0] sm:$0xf0]  ;;  %820 = vmatpush.bf16.msra.mxu1 %v2897_v17  ;;  %v2881_v33 = vor.u32 %v3170_v27, %v2880_v26  ;;  %v2757_v34 = vor.u32 %v3136_v28, %v2754_v30  ;;  %v2736_v35 = vld [vmem:[%s3905_s26 + $0x80] sm:$0xf]  ;;  %v3134_v36 = vld [vmem:[%s3905_s26 + $0x8c] sm:$0xf0] }
  0x4f   : > { %869 = vmatpush.bf16.msra.mxu2 %v2773_v21  ;;  %v2864_v37 = vld [vmem:[%s3905_s26 + $0x180] sm:$0xf]  ;;  %v2885_v38 = vor.u32 %v3168_v31, %v2882_v32  ;;  %v3166_v39 = vld [vmem:[%s3905_s26 + $0x18c] sm:$0xf0]  ;;  %v3132_v40 = vld [vmem:[%s3905_s26 + $0x84] sm:$0xf]  ;;  %v2737_v44 = vor.u32 %v3134_v36, %v2736_v35 }
  0x50   : > { %918 = vmatpush.bf16.msra.mxu3 %v2901_v25  ;;  %v2738_v41 = vld [vmem:[%s3905_s26 + $0x90] sm:$0xf0]  ;;  %v3164_v42 = vld [vmem:[%s3905_s26 + $0x184] sm:$0xf]  ;;  %v2865_v45 = vor.u32 %v3166_v39, %v2864_v37  ;;  %v2720_v47 = vld [vmem:[%s3905_s26 + $0x60] sm:$0xf] }
  0x51   : > { %v2866_v43 = vld [vmem:[%s3905_s26 + $0x190] sm:$0xf0]  ;;  %772 = vmatpush.bf16.msra.mxu0 %v2753_v29  ;;  %v2741_v46 = vor.u32 %v3132_v40, %v2738_v41  ;;  %v3130_v48 = vld [vmem:[%s3905_s26 + $0x6c] sm:$0xf0]  ;;  %v2848_v49 = vld [vmem:[%s3905_s26 + $0x160] sm:$0xf] }
  0x52   : > { %821 = vmatpush.bf16.msra.mxu1 %v2881_v33  ;;  %v2869_v50 = vor.u32 %v3164_v42, %v2866_v43  ;;  %v3162_v51 = vld [vmem:[%s3905_s26 + $0x16c] sm:$0xf0]  ;;  %v3128_v52 = vld [vmem:[%s3905_s26 + $0x64] sm:$0xf]  ;;  %v2722_v53 = vld [vmem:[%s3905_s26 + $0x70] sm:$0xf0]  ;;  %v2721_v56 = vor.u32 %v3130_v48, %v2720_v47 }
  0x53   : > { %870 = vmatpush.bf16.msra.mxu2 %v2757_v34  ;;  %v3160_v54 = vld [vmem:[%s3905_s26 + $0x164] sm:$0xf]  ;;  %v2850_v55 = vld [vmem:[%s3905_s26 + $0x170] sm:$0xf0]  ;;  %v2849_v57 = vor.u32 %v3162_v51, %v2848_v49  ;;  %v2725_v58 = vor.u32 %v3128_v52, %v2722_v53  ;;  %v2704_v59 = vld [vmem:[%s3905_s26 + $0x40] sm:$0xf] }
  0x54   : > { %919 = vmatpush.bf16.msra.mxu3 %v2885_v38  ;;  %v3126_v60 = vld [vmem:[%s3905_s26 + $0x4c] sm:$0xf0]  ;;  %v2832_v61 = vld [vmem:[%s3905_s26 + $0x140] sm:$0xf]  ;;  %v2853_v62 = vor.u32 %v3160_v54, %v2850_v55  ;;  %v3124_v0 = vld [vmem:[%s3905_s26 + $0x44] sm:$0xf] }
  0x55   : > { %773 = vmatpush.bf16.msra.mxu0 %v2737_v44  ;;  %v3158_v63 = vld [vmem:[%s3905_s26 + $0x14c] sm:$0xf0]  ;;  %v2706_v1 = vld [vmem:[%s3905_s26 + $0x50] sm:$0xf0]  ;;  %v3156_v2 = vld [vmem:[%s3905_s26 + $0x144] sm:$0xf]  ;;  %v2705_v4 = vor.u32 %v3126_v60, %v2704_v59 }
  0x56   : > { %822 = vmatpush.bf16.msra.mxu1 %v2865_v45  ;;  %v2834_v3 = vld [vmem:[%s3905_s26 + $0x150] sm:$0xf0]  ;;  %v2833_v5 = vor.u32 %v3158_v63, %v2832_v61  ;;  %v2709_v6 = vor.u32 %v3124_v0, %v2706_v1  ;;  %v2688_v7 = vld [vmem:[%s3905_s26 + $0x20] sm:$0xf]  ;;  %v3122_v8 = vld [vmem:[%s3905_s26 + $0x2c] sm:$0xf0] }
  0x57   : > { %871 = vmatpush.bf16.msra.mxu2 %v2741_v46  ;;  %v2816_v9 = vld [vmem:[%s3905_s26 + $0x120] sm:$0xf]  ;;  %v2837_v10 = vor.u32 %v3156_v2, %v2834_v3  ;;  %v3154_v11 = vld [vmem:[%s3905_s26 + $0x12c] sm:$0xf0]  ;;  %v3120_v12 = vld [vmem:[%s3905_s26 + $0x24] sm:$0xf]  ;;  %v2689_v16 = vor.u32 %v3122_v8, %v2688_v7 }
  0x58   : > { %920 = vmatpush.bf16.msra.mxu3 %v2869_v50  ;;  %v2690_v13 = vld [vmem:[%s3905_s26 + $0x30] sm:$0xf0]  ;;  %v3152_v14 = vld [vmem:[%s3905_s26 + $0x124] sm:$0xf]  ;;  %v2672_v17 = vld [vmem:[%s3905_s26] sm:$0xf]  ;;  %v2817_v19 = vor.u32 %v3154_v11, %v2816_v9 }
  0x59   : > { %774 = vmatpush.bf16.msra.mxu0 %v2721_v56  ;;  %v2818_v15 = vld [vmem:[%s3905_s26 + $0x130] sm:$0xf0]  ;;  %v3118_v18 = vld [vmem:[%s3905_s26 + $0xc] sm:$0xf0]  ;;  %v2693_v20 = vor.u32 %v3120_v12, %v2690_v13  ;;  %v2800_v21 = vld [vmem:[%s3905_s26 + $0x100] sm:$0xf] }
  0x5a   : > { %823 = vmatpush.bf16.msra.mxu1 %v2849_v57  ;;  %v3150_v22 = vld [vmem:[%s3905_s26 + $0x10c] sm:$0xf0]  ;;  %v3116_v23 = vld [vmem:[%s3905_s26 + $0x4] sm:$0xf]  ;;  %v2821_v24 = vor.u32 %v3152_v14, %v2818_v15  ;;  %v2674_v25 = vld [vmem:[%s3905_s26 + $0x10] sm:$0xf0]  ;;  %v2673_v31 = vor.u32 %v3118_v18, %v2672_v17 }
  0x5b   : > { %872 = vmatpush.bf16.msra.mxu2 %v2725_v58  ;;  %v3148_v26 = vld [vmem:[%s3905_s26 + $0x104] sm:$0xf]  ;;  %v2802_v27 = vld [vmem:[%s3905_s26 + $0x110] sm:$0xf0]  ;;  %v2608_v28 = vld [vmem:[%s3895_s21] sm:$0xf]  ;;  %v2801_v35 = vor.u32 %v3150_v22, %v2800_v21  ;;  %v2677_v36 = vor.u32 %v3116_v23, %v2674_v25 }
  0x5c   : > { %921 = vmatpush.bf16.msra.mxu3 %v2853_v62  ;;  %v3145_v29 = vld [vmem:[%s3905_s26 + $0xec] sm:$0xf]  ;;  %v2794_v30 = vld [vmem:[%s3905_s26 + $0xf8] sm:$0xf0]  ;;  %v3101_v32 = vld [vmem:[%s3895_s21 + $0x4] sm:$0xf0]  ;;  %v2805_v39 = vor.u32 %v3148_v26, %v2802_v27 }
  0x5d   : > { %775 = vmatpush.bf16.msra.mxu0 %v2705_v4  ;;  %v3177_v33 = vld [vmem:[%s3905_s26 + $0x1ec] sm:$0xf]  ;;  %v2922_v34 = vld [vmem:[%s3905_s26 + $0x1f8] sm:$0xf0]  ;;  %v3100_v37 = vld [vmem:[%s3895_s21 + $0x4] sm:$0xf]  ;;  %v2797_v40 = vor.u32 %v3145_v29, %v2794_v30  ;;  %v3986_v44 = vor.u32 %v3101_v32, %v2608_v28 }
  0x5e   : > { %824 = vmatpush.bf16.msra.mxu1 %v2833_v5  ;;  %v2610_v38 = vld [vmem:[%s3895_s21 + $0x8] sm:$0xf0]  ;;  %v2792_v41 = vld [vmem:[%s3905_s26 + $0xe8] sm:$0xf]  ;;  %v3147_v42 = vld [vmem:[%s3905_s26 + $0xf4] sm:$0xf0]  ;;  %v2925_v45 = vor.u32 %v3177_v33, %v2922_v34 }
  0x5f   : > { %873 = vmatpush.bf16.msra.mxu2 %v2709_v6  ;;  %v2920_v43 = vld [vmem:[%s3905_s26 + $0x1e8] sm:$0xf]  ;;  %v3179_v46 = vld [vmem:[%s3905_s26 + $0x1f4] sm:$0xf0]  ;;  %v3141_v47 = vld [vmem:[%s3905_s26 + $0xcc] sm:$0xf]  ;;  %v3991_v49 = vor.u32 %v3100_v37, %v2610_v38  ;;  %v2793_v52 = vor.u32 %v3147_v42, %v2792_v41 }
  0x60   : > { %922 = vmatpush.bf16.msra.mxu3 %v2837_v10  ;;  %v2778_v48 = vld [vmem:[%s3905_s26 + $0xd8] sm:$0xf0]  ;;  %v3173_v50 = vld [vmem:[%s3905_s26 + $0x1cc] sm:$0xf]  ;;  %v2921_v53 = vor.u32 %v3179_v46, %v2920_v43  ;;  %v2776_v55 = vld [vmem:[%s3905_s26 + $0xc8] sm:$0xf] }
  0x61   : > { %776 = vmatpush.bf16.msra.mxu0 %v2689_v16  ;;  %v2906_v51 = vld [vmem:[%s3905_s26 + $0x1d8] sm:$0xf0]  ;;  %v2781_v54 = vor.u32 %v3141_v47, %v2778_v48  ;;  %v3143_v56 = vld [vmem:[%s3905_s26 + $0xd4] sm:$0xf0]  ;;  %v2904_v58 = vld [vmem:[%s3905_s26 + $0x1c8] sm:$0xf] }
  0x62   : > { %825 = vmatpush.bf16.msra.mxu1 %v2817_v19  ;;  %v2909_v57 = vor.u32 %v3173_v50, %v2906_v51  ;;  %v3175_v59 = vld [vmem:[%s3905_s26 + $0x1d4] sm:$0xf0]  ;;  %v2777_v60 = vor.u32 %v3143_v56, %v2776_v55  ;;  %v3137_v61 = vld [vmem:[%s3905_s26 + $0xac] sm:$0xf]  ;;  %v2762_v62 = vld [vmem:[%s3905_s26 + $0xb8] sm:$0xf0] }
  0x63   : > { %874 = vmatpush.bf16.msra.mxu2 %v2693_v20  ;;  %v3169_v63 = vld [vmem:[%s3905_s26 + $0x1ac] sm:$0xf]  ;;  %v2905_v0 = vor.u32 %v3175_v59, %v2904_v58  ;;  %v2765_v1 = vor.u32 %v3137_v61, %v2762_v62  ;;  %v2890_v2 = vld [vmem:[%s3905_s26 + $0x1b8] sm:$0xf0]  ;;  %v2760_v3 = vld [vmem:[%s3905_s26 + $0xa8] sm:$0xf] }
  0x64   : > { %923 = vmatpush.bf16.msra.mxu3 %v2821_v24  ;;  %v3139_v4 = vld [vmem:[%s3905_s26 + $0xb4] sm:$0xf0]  ;;  %v2893_v5 = vor.u32 %v3169_v63, %v2890_v2  ;;  %v2888_v6 = vld [vmem:[%s3905_s26 + $0x1a8] sm:$0xf]  ;;  %v2616_v10 = vld [vmem:[%s3895_s21 + $0x10] sm:$0xf] }
  0x65   : > { %777 = vmatpush.bf16.msra.mxu0 %v2673_v31  ;;  %v3171_v7 = vld [vmem:[%s3905_s26 + $0x1b4] sm:$0xf0]  ;;  %v2761_v8 = vor.u32 %v3139_v4, %v2760_v3  ;;  %v3102_v12 = vld [vmem:[%s3895_s21 + $0x14] sm:$0xf]  ;;  %v2618_v13 = vld [vmem:[%s3895_s21 + $0x18] sm:$0xf0] }
  0x66   : > { %826 = vmatpush.bf16.msra.mxu1 %v2801_v35  ;;  %v2889_v9 = vor.u32 %v3171_v7, %v2888_v6  ;;  %v3103_v11 = vld [vmem:[%s3895_s21 + $0x14] sm:$0xf0]  ;;  %v4017_v15 = vor.u32 %v3102_v12, %v2618_v13  ;;  %v3133_v16 = vld [vmem:[%s3905_s26 + $0x8c] sm:$0xf]  ;;  %v2746_v17 = vld [vmem:[%s3905_s26 + $0x98] sm:$0xf0] }
  0x67   : > { %875 = vmatpush.bf16.msra.mxu2 %v2677_v36  ;;  %v4015_v14 = vor.u32 %v3103_v11, %v2616_v10  ;;  %v3165_v18 = vld [vmem:[%s3905_s26 + $0x18c] sm:$0xf]  ;;  %v2749_v19 = vor.u32 %v3133_v16, %v2746_v17  ;;  %v2874_v20 = vld [vmem:[%s3905_s26 + $0x198] sm:$0xf0]  ;;  %v2744_v21 = vld [vmem:[%s3905_s26 + $0x88] sm:$0xf] }
  0x68   : > { %924 = vmatpush.bf16.msra.mxu3 %v2805_v39  ;;  %778 = vmatmul.bf16.vlgmr.msra.gmra.mxu0 %v3986_v44  ;;  %v3135_v22 = vld [vmem:[%s3905_s26 + $0x94] sm:$0xf0]  ;;  %v2877_v23 = vor.u32 %v3165_v18, %v2874_v20  ;;  %v2872_v25 = vld [vmem:[%s3905_s26 + $0x188] sm:$0xf]  ;;  %v2624_v28 = vld [vmem:[%s3895_s21 + $0x20] sm:$0xf] }
  0x69   : > { %827 = vmatmul.bf16.vlgmr.msra.gmra.mxu1 %v3991_v49  ;;  %966 = vmatpush.bf16.msrb.mxu0 %v2793_v52  ;;  %v2745_v24 = vor.u32 %v3135_v22, %v2744_v21  ;;  %v3167_v26 = vld [vmem:[%s3905_s26 + $0x194] sm:$0xf0]  ;;  %v3105_v29 = vld [vmem:[%s3895_s21 + $0x24] sm:$0xf0]  ;;  %v3104_v30 = vld [vmem:[%s3895_s21 + $0x24] sm:$0xf] }
  0x6a   : > { %876 = vmatmul.bf16.vlgmr.msra.gmra.mxu2 %v3986_v44  ;;  %1015 = vmatpush.bf16.msrb.mxu1 %v2921_v53  ;;  %v2873_v27 = vor.u32 %v3167_v26, %v2872_v25  ;;  %v2626_v31 = vld [vmem:[%s3895_s21 + $0x28] sm:$0xf0]  ;;  %v4035_v32 = vor.u32 %v3105_v29, %v2624_v28  ;;  %v2730_v35 = vld [vmem:[%s3905_s26 + $0x78] sm:$0xf0]  ;;  %v2728_v39 = vld [vmem:[%s3905_s26 + $0x68] sm:$0xf] }
  0x6b   : > { %1064 = vmatpush.bf16.msrb.mxu2 %v2797_v40  ;;  %925 = vmatmul.bf16.vlgmr.msra.gmra.mxu3 %v3991_v49  ;;  %v4037_v33 = vor.u32 %v3104_v30, %v2626_v31  ;;  %v3129_v34 = vld [vmem:[%s3905_s26 + $0x6c] sm:$0xf]  ;;  %v2858_v38 = vld [vmem:[%s3905_s26 + $0x178] sm:$0xf0]  ;;  %v3131_v40 = vld [vmem:[%s3905_s26 + $0x74] sm:$0xf0] }
  0x6c   : > { %1113 = vmatpush.bf16.msrb.mxu3 %v2925_v45  ;;  %v3161_v36 = vld [vmem:[%s3905_s26 + $0x16c] sm:$0xf]  ;;  %v2733_v37 = vor.u32 %v3129_v34, %v2730_v35  ;;  %v2729_v42 = vor.u32 %v3131_v40, %v2728_v39  ;;  %v2856_v43 = vld [vmem:[%s3905_s26 + $0x168] sm:$0xf]  ;;  %v3163_v45 = vld [vmem:[%s3905_s26 + $0x174] sm:$0xf0] }
  0x6d   : > { %967 = vmatpush.bf16.msrb.mxu0 %v2777_v60  ;;  %v2861_v41 = vor.u32 %v3161_v36, %v2858_v38  ;;  %v2857_v46 = vor.u32 %v3163_v45, %v2856_v43  ;;  %v2632_v47 = vld [vmem:[%s3895_s21 + $0x30] sm:$0xf]  ;;  %v3107_v48 = vld [vmem:[%s3895_s21 + $0x34] sm:$0xf0]  ;;  %v3106_v50 = vld [vmem:[%s3895_s21 + $0x34] sm:$0xf] }
  0x6e   : > { %1016 = vmatpush.bf16.msrb.mxu1 %v2905_v0  ;;  %v2634_v51 = vld [vmem:[%s3895_s21 + $0x38] sm:$0xf0]  ;;  %v4055_v52 = vor.u32 %v3107_v48, %v2632_v47  ;;  %v3157_v56 = vld [vmem:[%s3905_s26 + $0x14c] sm:$0xf]  ;;  %v2712_v59 = vld [vmem:[%s3905_s26 + $0x48] sm:$0xf] }
  0x6f   : > { %1065 = vmatpush.bf16.msrb.mxu2 %v2781_v54  ;;  %v4057_v53 = vor.u32 %v3106_v50, %v2634_v51  ;;  %v3125_v54 = vld [vmem:[%s3905_s26 + $0x4c] sm:$0xf]  ;;  %v2714_v55 = vld [vmem:[%s3905_s26 + $0x58] sm:$0xf0]  ;;  %v3127_v60 = vld [vmem:[%s3905_s26 + $0x54] sm:$0xf0] }
  0x70   : > { %1114 = vmatpush.bf16.msrb.mxu3 %v2909_v57  ;;  %v2717_v57 = vor.u32 %v3125_v54, %v2714_v55  ;;  %v2842_v58 = vld [vmem:[%s3905_s26 + $0x158] sm:$0xf0]  ;;  %v2713_v62 = vor.u32 %v3127_v60, %v2712_v59  ;;  %v2840_v63 = vld [vmem:[%s3905_s26 + $0x148] sm:$0xf]  ;;  %v3159_v0 = vld [vmem:[%s3905_s26 + $0x154] sm:$0xf0] }
  0x71   : > { %968 = vmatpush.bf16.msrb.mxu0 %v2761_v8  ;;  %v2845_v61 = vor.u32 %v3157_v56, %v2842_v58  ;;  %v2640_v2 = vld [vmem:[%s3895_s21 + $0x40] sm:$0xf]  ;;  %v3109_v3 = vld [vmem:[%s3895_s21 + $0x44] sm:$0xf0]  ;;  %v3108_v4 = vld [vmem:[%s3895_s21 + $0x44] sm:$0xf] }
  0x72   : > { %1017 = vmatpush.bf16.msrb.mxu1 %v2889_v9  ;;  %v4075_v6 = vor.u32 %v3109_v3, %v2640_v2  ;;  %v3121_v8 = vld [vmem:[%s3905_s26 + $0x2c] sm:$0xf]  ;;  %v2698_v9 = vld [vmem:[%s3905_s26 + $0x38] sm:$0xf0]  ;;  %v2696_v13 = vld [vmem:[%s3905_s26 + $0x28] sm:$0xf] }
  0x73   : > { %1066 = vmatpush.bf16.msrb.mxu2 %v2765_v1  ;;  %v2841_v1 = vor.u32 %v3159_v0, %v2840_v63  ;;  %v3153_v10 = vld [vmem:[%s3905_s26 + $0x12c] sm:$0xf]  ;;  %v2701_v11 = vor.u32 %v3121_v8, %v2698_v9  ;;  %v2826_v12 = vld [vmem:[%s3905_s26 + $0x138] sm:$0xf0]  ;;  %v3123_v16 = vld [vmem:[%s3905_s26 + $0x34] sm:$0xf0] }
  0x74   : > { %1115 = vmatpush.bf16.msrb.mxu3 %v2893_v5  ;;  %v2642_v5 = vld [vmem:[%s3895_s21 + $0x48] sm:$0xf0]  ;;  %v2829_v17 = vor.u32 %v3153_v10, %v2826_v12  ;;  %v2697_v18 = vor.u32 %v3123_v16, %v2696_v13  ;;  %v3155_v20 = vld [vmem:[%s3905_s26 + $0x134] sm:$0xf0]  ;;  %v2648_v22 = vld [vmem:[%s3895_s21 + $0x50] sm:$0xf] }
  0x75   : > { %969 = vmatpush.bf16.msrb.mxu0 %v2745_v24  ;;  %v4077_v7 = vor.u32 %v3108_v4, %v2642_v5  ;;  %v3110_v24 = vld [vmem:[%s3895_s21 + $0x54] sm:$0xf]  ;;  %v2650_v25 = vld [vmem:[%s3895_s21 + $0x58] sm:$0xf0]  ;;  %v3117_v28 = vld [vmem:[%s3905_s26 + $0xc] sm:$0xf] }
  0x76   : > { %1018 = vmatpush.bf16.msrb.mxu1 %v2873_v27  ;;  %v4097_v27 = vor.u32 %v3110_v24, %v2650_v25  ;;  %v2682_v29 = vld [vmem:[%s3905_s26 + $0x18] sm:$0xf0]  ;;  %v3149_v30 = vld [vmem:[%s3905_s26 + $0x10c] sm:$0xf]  ;;  %v2680_v35 = vld [vmem:[%s3905_s26 + $0x8] sm:$0xf] }
  0x77   : > { %1067 = vmatpush.bf16.msrb.mxu2 %v2749_v19  ;;  %v2824_v19 = vld [vmem:[%s3905_s26 + $0x128] sm:$0xf]  ;;  %v2685_v31 = vor.u32 %v3117_v28, %v2682_v29  ;;  %v2810_v34 = vld [vmem:[%s3905_s26 + $0x118] sm:$0xf0]  ;;  %v3119_v36 = vld [vmem:[%s3905_s26 + $0x14] sm:$0xf0] }
  0x78   : > { %783 = vmatmul.bf16.gmra.mxu0 %v4015_v14  ;;  %1116 = vmatpush.bf16.msrb.mxu3 %v2877_v23  ;;  %v2825_v21 = vor.u32 %v3155_v20, %v2824_v19  ;;  %v3111_v23 = vld [vmem:[%s3895_s21 + $0x54] sm:$0xf0]  ;;  %v2681_v38 = vor.u32 %v3119_v36, %v2680_v35  ;;  %v2808_v39 = vld [vmem:[%s3905_s26 + $0x108] sm:$0xf]  ;;  %v3112_v45 = vld [vmem:[%s3895_s21 + $0x64] sm:$0xf] }
  0x79   : > { %832 = vmatmul.bf16.gmra.mxu1 %v4017_v15  ;;  %970 = vmatpush.bf16.msrb.mxu0 %v2729_v42  ;;  %v4095_v26 = vor.u32 %v3111_v23, %v2648_v22  ;;  %v3151_v40 = vld [vmem:[%s3905_s26 + $0x114] sm:$0xf0]  ;;  %v2656_v42 = vld [vmem:[%s3895_s21 + $0x60] sm:$0xf]  ;;  %v3113_v43 = vld [vmem:[%s3895_s21 + $0x64] sm:$0xf0] }
  0x7a   : > { %881 = vmatmul.bf16.gmra.mxu2 %v4015_v14  ;;  %1019 = vmatpush.bf16.msrb.mxu1 %v2857_v46  ;;  %v2658_v46 = vld [vmem:[%s3895_s21 + $0x68] sm:$0xf0]  ;;  %v4115_v47 = vor.u32 %v3113_v43, %v2656_v42  ;;  %v2664_v50 = vld [vmem:[%s3895_s21 + $0x70] sm:$0xf]  ;;  %v3115_v51 = vld [vmem:[%s3895_s21 + $0x74] sm:$0xf0] }
  0x7b   : > { %930 = vmatmul.bf16.gmra.mxu3 %v4017_v15  ;;  %1068 = vmatpush.bf16.msrb.mxu2 %v2733_v37  ;;  %v2813_v37 = vor.u32 %v3149_v30, %v2810_v34  ;;  %v4117_v48 = vor.u32 %v3112_v45, %v2658_v46  ;;  %v3114_v54 = vld [vmem:[%s3895_s21 + $0x74] sm:$0xf]  ;;  %v2666_v55 = vld [vmem:[%s3895_s21 + $0x78] sm:$0xf0]  ;;  %v4127_v56 = vor.u32 %v3115_v51, %v2664_v50  ;;  %s4152_s24 = scalar_lea.vmem [#allocation8], %s2604_s7  ;;  %s5501_s11 = scalar_lea.vmem [#allocation9], %s2602_s19 }
  0x7c   : > { %1117 = vmatpush.bf16.msrb.mxu3 %v2861_v41  ;;  %v2809_v41 = vor.u32 %v3151_v40, %v2808_v39  ;;  %v3210_v12 = vld [vmem:[%s4152_s24 + $0xf4] sm:$0xf]  ;;  %v3082_v13 = vld [vmem:[%s4152_s24 + $0xf8] sm:$0xf0]  ;;  %v3016_v23 = vld [vmem:[%s4152_s24 + $0x70] sm:$0xf] }
  0x7d   : > { %971 = vmatpush.bf16.msrb.mxu0 %v2713_v62  ;;  %v3085_v19 = vor.u32 %v3210_v12, %v3082_v13  ;;  %v3211_v25 = vld [vmem:[%s4152_s24 + $0xf4] sm:$0xf0]  ;;  %v3192_v40 = vld [vmem:[%s4152_s24 + $0x64] sm:$0xf]  ;;  %v3074_v45 = vld [vmem:[%s4152_s24 + $0xe8] sm:$0xf0] }
  0x7e   : > { %1020 = vmatpush.bf16.msrb.mxu1 %v2841_v1  ;;  %v3208_v43 = vld [vmem:[%s4152_s24 + $0xe4] sm:$0xf]  ;;  %v3002_v13 = vld [vmem:[%s4152_s24 + $0x58] sm:$0xf0]  ;;  %p3086_p5 = scmp.ne.s32.totalorder %s3661_s18, 0 }
  0x7f   : > { %1069 = vmatpush.bf16.msrb.mxu2 %v2717_v57  ;;  %v4129_v57 = vor.u32 %v3114_v54, %v2666_v55  ;;  %v3077_v50 = vor.u32 %v3208_v43, %v3074_v45 }
  0x80   : > { %1118 = vmatpush.bf16.msrb.mxu3 %v2845_v61 }
  0x81   : > { %972 = vmatpush.bf16.msrb.mxu0 %v2697_v18 }
  0x82   : > { %1021 = vmatpush.bf16.msrb.mxu1 %v2825_v21 }
  0x83   : > { %1070 = vmatpush.bf16.msrb.mxu2 %v2701_v11 }
  0x84   : > { %1119 = vmatpush.bf16.msrb.mxu3 %v2829_v17 }
  0x85   : > { %973 = vmatpush.bf16.msrb.mxu0 %v2681_v38 }
  0x86   : > { %1022 = vmatpush.bf16.msrb.mxu1 %v2809_v41  ;;  %v3010_v41 = vld [vmem:[%s4152_s24 + $0x68] sm:$0xf0] }
  0x87   : > { %1071 = vmatpush.bf16.msrb.mxu2 %v2685_v31  ;;  %v3013_v46 = vor.u32 %v3192_v40, %v3010_v41 }
  0x88   : > { %788 = vmatmul.bf16.gmra.mxu0 %v4035_v32  ;;  %1120 = vmatpush.bf16.msrb.mxu3 %v2813_v37 }
  0x89   : > { %837 = vmatmul.bf16.gmra.mxu1 %v4037_v33 }
  0x8a   : > { %886 = vmatmul.bf16.gmra.mxu2 %v4035_v32 }
  0x8b   : > { %935 = vmatmul.bf16.gmra.mxu3 %v4037_v33 }
  0x8c   : > { %2189 = vmatpush.bf16.msra.mxu3 %v3085_v19  ;;  %v3066_v19 = vld [vmem:[%s4152_s24 + $0xd8] sm:$0xf0] }
  0x90   : > { %2190 = vmatpush.bf16.msra.mxu3 %v3077_v50  ;;  %v2994_v50 = vld [vmem:[%s4152_s24 + $0x48] sm:$0xf0] }
  0x98   : > { %793 = vmatmul.bf16.gmra.mxu0 %v4055_v52 }
  0x99   : > { %842 = vmatmul.bf16.gmra.mxu1 %v4057_v53 }
  0x9a   : > { %891 = vmatmul.bf16.gmra.mxu2 %v4055_v52 }
  0x9b   : > { %940 = vmatmul.bf16.gmra.mxu3 %v4057_v53 }
  0xa8   : > { %798 = vmatmul.bf16.gmra.mxu0 %v4075_v6 }
  0xa9   : > { %847 = vmatmul.bf16.gmra.mxu1 %v4077_v7 }
  0xaa   : > { %896 = vmatmul.bf16.gmra.mxu2 %v4075_v6 }
  0xab   : > { %945 = vmatmul.bf16.gmra.mxu3 %v4077_v7 }
  0xb8   : > { %803 = vmatmul.bf16.gmra.mxu0 %v4095_v26 }
  0xb9   : > { %852 = vmatmul.bf16.gmra.mxu1 %v4097_v27 }
  0xba   : > { %901 = vmatmul.bf16.gmra.mxu2 %v4095_v26 }
  0xbb   : > { %950 = vmatmul.bf16.gmra.mxu3 %v4097_v27 }
  0xc8   : > { %808 = vmatmul.bf16.gmra.mxu0 %v4115_v47 }
  0xc9   : > { %857 = vmatmul.bf16.gmra.mxu1 %v4117_v48 }
  0xca   : > { %906 = vmatmul.bf16.gmra.mxu2 %v4115_v47 }
  0xcb   : > { %955 = vmatmul.bf16.gmra.mxu3 %v4117_v48 }
  0xd8   : > { %813 = vmatmul.bf16.gmra.mxu0 %v4127_v56 }
  0xd9   : > { %862 = vmatmul.bf16.gmra.mxu1 %v4129_v57 }
  0xda   : > { %911 = vmatmul.bf16.gmra.mxu2 %v4127_v56 }
  0xdb   : > { %960 = vmatmul.bf16.gmra.mxu3 %v4129_v57 }
  0xe5   : > { %v779_v58 = vpop.f32.mrf.mxu0 }
  0xe6   : > { %v828_v59 = vpop.f32.mrf.mxu1 }
  0xe7   : > { %v4135_v60 = vadd.f32 %v828_v59, %v779_v58  ;;  %v3008_v58 = vld [vmem:[%s4152_s24 + $0x60] sm:$0xf]  ;;  %v3193_v59 = vld [vmem:[%s4152_s24 + $0x64] sm:$0xf0] }
  0xe8   : > { %974 = vmatmul.bf16.vlgmr.msrb.gmra.mxu0 %v3986_v44 }
  0xe9   : > { %1023 = vmatmul.bf16.vlgmr.msrb.gmra.mxu1 %v3991_v49 }
  0xea   : > { %1072 = vmatmul.bf16.vlgmr.msrb.gmra.mxu2 %v3986_v44  ;;  %v3194_v44 = vld [vmem:[%s4152_s24 + $0x74] sm:$0xf] }
  0xeb   : > { %1121 = vmatmul.bf16.vlgmr.msrb.gmra.mxu3 %v3991_v49  ;;  %v3018_v49 = vld [vmem:[%s4152_s24 + $0x78] sm:$0xf0] }
  0xec   : > { %v3021_v11 = vor.u32 %v3194_v44, %v3018_v49 }
  0xed   : > { %v877_v61 = vpop.f32.mrf.mxu2  ;;  %v781_v63 = vpop.f32.mrf.mxu0 }
  0xee   : > { %v926_v62 = vpop.f32.mrf.mxu3  ;;  %v830_v1 = vpop.f32.mrf.mxu1  ;;  %2140 = vmatpush.bf16.msra.mxu2 %v3021_v11  ;;  %v3190_v11 = vld [vmem:[%s4152_s24 + $0x54] sm:$0xf] }
  0xef   : > { %v4141_v0 = vadd.f32 %v926_v62, %v877_v61  ;;  %v4143_v2 = vadd.f32 %v830_v1, %v781_v63  ;;  %v3072_v61 = vld [vmem:[%s4152_s24 + $0xe0] sm:$0xf]  ;;  %v3009_v63 = vor.u32 %v3193_v59, %v3008_v58  ;;  %v3209_v1 = vld [vmem:[%s4152_s24 + $0xe4] sm:$0xf0] }
  0xf1   : > { %v2927_v58 = vmul.f32 -1.442695, %v4141_v0 }
  0xf2   : > { %2141 = vmatpush.bf16.msra.mxu2 %v3013_v46  ;;  %v3188_v46 = vld [vmem:[%s4152_s24 + $0x44] sm:$0xf] }
  0xf5   : > { %v879_v3 = vpop.f32.mrf.mxu2  ;;  %v784_v5 = vpop.f32.mrf.mxu0 }
  0xf6   : > { %v928_v4 = vpop.f32.mrf.mxu3  ;;  %v833_v9 = vpop.f32.mrf.mxu1 }
  0xf7   : > { %v4147_v8 = vadd.f32 %v928_v4, %v879_v3  ;;  %v4149_v10 = vadd.f32 %v833_v9, %v784_v5  ;;  %v3073_v3 = vor.u32 %v3209_v1, %v3072_v61  ;;  %v2928_v1 = vmul.f32 -1.442695, %v4143_v2 }
  0xf8   : > { %979 = vmatmul.bf16.gmra.mxu0 %v4015_v14 }
  0xf9   : > { %1028 = vmatmul.bf16.gmra.mxu1 %v4017_v15 }
  0xfa   : > { %1077 = vmatmul.bf16.gmra.mxu2 %v4015_v14  ;;  %v3195_v14 = vld [vmem:[%s4152_s24 + $0x74] sm:$0xf0] }
  0xfb   : > { %1126 = vmatmul.bf16.gmra.mxu3 %v4017_v15  ;;  %v3017_v24 = vor.u32 %v3195_v14, %v3016_v23  ;;  %v3080_v15 = vld [vmem:[%s4152_s24 + $0xf0] sm:$0xf] }
  0xfc   : > { %v3081_v31 = vor.u32 %v3211_v25, %v3080_v15 }
  0xfd   : > { %v882_v16 = vpop.f32.mrf.mxu2  ;;  %v786_v18 = vpop.f32.mrf.mxu0  ;;  %2042 = vmatpush.bf16.msra.mxu0 %v3017_v24 }
  0xfe   : > { %v931_v17 = vpop.f32.mrf.mxu3  ;;  %v835_v21 = vpop.f32.mrf.mxu1  ;;  %2091 = vmatpush.bf16.msra.mxu1 %v3081_v31 }
  0xff   : > { %v4161_v20 = vadd.f32 %v931_v17, %v882_v16  ;;  %v4163_v22 = vadd.f32 %v835_v21, %v786_v18  ;;  %v3206_v18 = vld [vmem:[%s4152_s24 + $0xd4] sm:$0xf]  ;;  %v3005_v21 = vor.u32 %v3190_v11, %v3002_v13 }
 0x101   : > { %2043 = vmatpush.bf16.msra.mxu0 %v3009_v63  ;;  %2142 = vmatpush.bf16.msra.mxu2 %v3005_v21  ;;  %v3189_v63 = vld [vmem:[%s4152_s24 + $0x44] sm:$0xf0] }
 0x102   : > { %2092 = vmatpush.bf16.msra.mxu1 %v3073_v3  ;;  %v3056_v3 = vld [vmem:[%s4152_s24 + $0xc0] sm:$0xf] }
 0x105   : > { %v884_v28 = vpop.f32.mrf.mxu2  ;;  %v789_v30 = vpop.f32.mrf.mxu0 }
 0x106   : > { %v933_v29 = vpop.f32.mrf.mxu3  ;;  %v838_v34 = vpop.f32.mrf.mxu1 }
 0x107   : > { %v4169_v35 = vadd.f32 %v933_v29, %v884_v28  ;;  %v4172_v36 = vadd.f32 %v838_v34, %v789_v30  ;;  %v3000_v28 = vld [vmem:[%s4152_s24 + $0x50] sm:$0xf]  ;;  %v3191_v29 = vld [vmem:[%s4152_s24 + $0x54] sm:$0xf0] }
 0x108   : > { %984 = vmatmul.bf16.gmra.mxu0 %v4035_v32 }
 0x109   : > { %1033 = vmatmul.bf16.gmra.mxu1 %v4037_v33 }
 0x10a   : > { %1082 = vmatmul.bf16.gmra.mxu2 %v4035_v32 }
 0x10b   : > { %1131 = vmatmul.bf16.gmra.mxu3 %v4037_v33 }
 0x10d   : > { %v887_v37 = vpop.f32.mrf.mxu2  ;;  %v791_v39 = vpop.f32.mrf.mxu0 }
 0x10e   : > { %v936_v38 = vpop.f32.mrf.mxu3  ;;  %v840_v42 = vpop.f32.mrf.mxu1 }
 0x10f   : > { %v4181_v51 = vadd.f32 %v936_v38, %v887_v37  ;;  %v4183_v33 = vadd.f32 %v840_v42, %v791_v39  ;;  %v3001_v37 = vor.u32 %v3191_v29, %v3000_v28  ;;  %v3064_v38 = vld [vmem:[%s4152_s24 + $0xd0] sm:$0xf]  ;;  %v3207_v39 = vld [vmem:[%s4152_s24 + $0xd4] sm:$0xf0]  ;;  %v3050_v29 = vld [vmem:[%s4152_s24 + $0xb8] sm:$0xf0] }
 0x110   : > { %v3065_v40 = vor.u32 %v3207_v39, %v3064_v38  ;;  %v2930_v39 = vmul.f32 -1.442695, %v4149_v10 }
 0x111   : > { %5689 = vst [vmem:[#allocation23_spill] sm:$0xff] %v4181_v51  ;;  %2044 = vmatpush.bf16.msra.mxu0 %v3001_v37 }
 0x112   : > { %2093 = vmatpush.bf16.msra.mxu1 %v3065_v40 }
 0x115   : > { %v889_v32 = vpop.f32.mrf.mxu2  ;;  %v794_v55 = vpop.f32.mrf.mxu0 }
 0x116   : > { %v938_v54 = vpop.f32.mrf.mxu3  ;;  %v843_v62 = vpop.f32.mrf.mxu1 }
 0x117   : > { %v4190_v4 = vadd.f32 %v938_v54, %v889_v32  ;;  %v4192_v5 = vadd.f32 %v843_v62, %v794_v55  ;;  %v3204_v32 = vld [vmem:[%s4152_s24 + $0xc4] sm:$0xf]  ;;  %v3058_v54 = vld [vmem:[%s4152_s24 + $0xc8] sm:$0xf0]  ;;  %v2997_v55 = vor.u32 %v3188_v46, %v2994_v50  ;;  %v2992_v62 = vld [vmem:[%s4152_s24 + $0x40] sm:$0xf] }
 0x118   : > { %989 = vmatmul.bf16.gmra.mxu0 %v4055_v52  ;;  %v3061_v59 = vor.u32 %v3204_v32, %v3058_v54  ;;  %v2993_v11 = vor.u32 %v3189_v63, %v2992_v62  ;;  %v2932_v50 = vmul.f32 -1.442695, %v4163_v22 }
 0x119   : > { %5690 = vst [vmem:[#allocation24_spill] sm:$0xff] %v4190_v4  ;;  %1038 = vmatmul.bf16.gmra.mxu1 %v4057_v53  ;;  %2143 = vmatpush.bf16.msra.mxu2 %v2997_v55 }
 0x11a   : > { %5691 = vst [vmem:[#allocation25_spill] sm:$0xff] %v4192_v5  ;;  %1087 = vmatmul.bf16.gmra.mxu2 %v4055_v52  ;;  %v3069_v52 = vor.u32 %v3206_v18, %v3066_v19  ;;  %2045 = vmatpush.bf16.msra.mxu0 %v2993_v11 }
 0x11b   : > { %1136 = vmatmul.bf16.gmra.mxu3 %v4057_v53 }
 0x11c   : > { %2191 = vmatpush.bf16.msra.mxu3 %v3069_v52  ;;  %v3186_v52 = vld [vmem:[%s4152_s24 + $0x34] sm:$0xf] }
 0x11d   : > { %v892_v9 = vpop.f32.mrf.mxu2  ;;  %v796_v49 = vpop.f32.mrf.mxu0 }
 0x11e   : > { %v941_v44 = vpop.f32.mrf.mxu3  ;;  %v845_v12 = vpop.f32.mrf.mxu1 }
 0x11f   : > { %v4199_v16 = vadd.f32 %v941_v44, %v892_v9  ;;  %v4201_v17 = vadd.f32 %v845_v12, %v796_v49  ;;  %v3205_v9 = vld [vmem:[%s4152_s24 + $0xc4] sm:$0xf0] }
 0x120   : > { %2192 = vmatpush.bf16.msra.mxu3 %v3061_v59  ;;  %v3057_v13 = vor.u32 %v3205_v9, %v3056_v3 }
 0x121   : > { %5692 = vst [vmem:[#allocation26_spill] sm:$0xff] %v4199_v16 }
 0x122   : > { %5693 = vst [vmem:[#allocation27_spill] sm:$0xff] %v4201_v17  ;;  %2094 = vmatpush.bf16.msra.mxu1 %v3057_v13 }
 0x125   : > { %v894_v23 = vpop.f32.mrf.mxu2  ;;  %v799_v14 = vpop.f32.mrf.mxu0 }
 0x126   : > { %v943_v53 = vpop.f32.mrf.mxu3  ;;  %v848_v24 = vpop.f32.mrf.mxu1 }
 0x127   : > { %v4205_v15 = vadd.f32 %v943_v53, %v894_v23  ;;  %v4224_v45 = vadd.f32 %v848_v24, %v799_v14  ;;  %v2986_v23 = vld [vmem:[%s4152_s24 + $0x38] sm:$0xf0]  ;;  %v3202_v53 = vld [vmem:[%s4152_s24 + $0xb4] sm:$0xf] }
 0x128   : > { %994 = vmatmul.bf16.gmra.mxu0 %v4075_v6  ;;  %v2989_v28 = vor.u32 %v3186_v52, %v2986_v23  ;;  %v2984_v23 = vld [vmem:[%s4152_s24 + $0x30] sm:$0xf] }
 0x129   : > { %5694 = vst [vmem:[#allocation28_spill] sm:$0xff] %v4205_v15  ;;  %1043 = vmatmul.bf16.gmra.mxu1 %v4077_v7 }
 0x12a   : > { %1092 = vmatmul.bf16.gmra.mxu2 %v4075_v6  ;;  %v2926_v6 = vmul.f32 -1.442695, %v4135_v60 }
 0x12b   : > { %1141 = vmatmul.bf16.gmra.mxu3 %v4077_v7  ;;  %2144 = vmatpush.bf16.msra.mxu2 %v2989_v28  ;;  %v3048_v28 = vld [vmem:[%s4152_s24 + $0xb0] sm:$0xf] }
 0x12c   : > { %3333 = vpow2.f32 %v2926_v6  ;;  %v2931_v6 = vmul.f32 -1.442695, %v4161_v20 }
 0x12d   : > { %v897_v25 = vpop.f32.mrf.mxu2  ;;  %v4213_v31 = vpop.f32.mrf.mxu0  ;;  %3335 = vpow2.f32 %v2927_v58 }
 0x12e   : > { %v946_v30 = vpop.f32.mrf.mxu3  ;;  %v4215_v34 = vpop.f32.mrf.mxu1  ;;  %3337 = vpow2.f32 %v2928_v1  ;;  %v2933_v1 = vmul.f32 -1.442695, %v4169_v35 }
 0x12f   : > { %v4235_v61 = vadd.f32 %v946_v30, %v897_v25  ;;  %v2929_v25 = vmul.f32 -1.442695, %v4147_v8 }
 0x131   : > { %5697 = vst [vmem:[#allocation31_spill] sm:$0xff] %v4235_v61  ;;  %v3201_v61 = vld [vmem:[%s4152_s24 + $0xa4] sm:$0xf0] }
 0x135   : > { %v4220_v7 = vpop.f32.mrf.mxu2  ;;  %v804_v42 = vpop.f32.mrf.mxu0 }
 0x136   : > { %5695 = vst [vmem:[#allocation29_spill] sm:$0xff] %v4220_v7  ;;  %v4222_v41 = vpop.f32.mrf.mxu3  ;;  %v853_v43 = vpop.f32.mrf.mxu1  ;;  %v3040_v7 = vld [vmem:[%s4152_s24 + $0xa0] sm:$0xf] }
 0x137   : > { %5696 = vst [vmem:[#allocation30_spill] sm:$0xff] %v4222_v41  ;;  %v4246_v18 = vadd.f32 %v853_v43, %v804_v42  ;;  %v3053_v42 = vor.u32 %v3202_v53, %v3050_v29  ;;  %v3203_v29 = vld [vmem:[%s4152_s24 + $0xb4] sm:$0xf0]  ;;  %v2937_v41 = vmul.f32 -1.442695, %v4190_v4 }
 0x138   : > { %999 = vmatmul.bf16.gmra.mxu0 %v4095_v26 }
 0x139   : > { %1048 = vmatmul.bf16.gmra.mxu1 %v4097_v27  ;;  %5700 = vst [vmem:[#allocation34_spill] sm:$0xff] %v4246_v18  ;;  %2193 = vmatpush.bf16.msra.mxu3 %v3053_v42  ;;  %v2976_v18 = vld [vmem:[%s4152_s24 + $0x20] sm:$0xf] }
 0x13a   : > { %1097 = vmatmul.bf16.gmra.mxu2 %v4095_v26 }
 0x13b   : > { %1146 = vmatmul.bf16.gmra.mxu3 %v4097_v27  ;;  %v3334_v27 = vpop.eup %3333 }
 0x13c   : > { %v4248_v19 = vadd.f32 1.0, %v3334_v27  ;;  %v3336_v24 = vpop.eup %3335 }
 0x13d   : > { %v902_v44 = vpop.f32.mrf.mxu2  ;;  %v4242_v49 = vpop.f32.mrf.mxu0  ;;  %v4268_v43 = vadd.f32 1.0, %v3336_v24 }
 0x13e   : > { %v951_v26 = vpop.f32.mrf.mxu3  ;;  %5698 = vst [vmem:[#allocation32_spill] sm:$0xff] %v4242_v49  ;;  %v4244_v12 = vpop.f32.mrf.mxu1  ;;  %3339 = vrcp.f32 %v4248_v19  ;;  %v1299_v11 = vand.u32 2147483647, %v4248_v19  ;;  %vm1295_vm0 = vweird.f32 %v4248_v19 }
 0x13f   : > { %5699 = vst [vmem:[#allocation33_spill] sm:$0xff] %v4244_v12  ;;  %v4250_v21 = vadd.f32 %v951_v26, %v902_v44  ;;  %v3338_v38 = vpop.eup %3337  ;;  %3341 = vpow2.f32 %v2929_v25  ;;  %v3187_v25 = vld [vmem:[%s4152_s24 + $0x34] sm:$0xf0]  ;;  %vm1310_vm4 = vweird.f32 %v4268_v43 }
 0x140   : > { %v4271_v46 = vadd.f32 1.0, %v3338_v38  ;;  %3343 = vpow2.f32 %v2930_v39  ;;  %vm4329_vm2 = vcmp.eq.f32.partialorder %v1299_v11, 8.507059e+37  ;;  %v1314_v11 = vand.u32 2147483647, %v4268_v43 }
 0x141   : > { %5701 = vst [vmem:[#allocation35_spill] sm:$0xff] %v4250_v21  ;;  %3345 = vpow2.f32 %v2931_v6 }
 0x142   : > { %3347 = vrcp.f32 %v4268_v43  ;;  %vm1325_vm5 = vweird.f32 %v4271_v46  ;;  %vm4390_vm8 = vcmp.eq.f32.partialorder %v1314_v11, 8.507059e+37 }
 0x143   : > { %3349 = vrcp.f32 %v4271_v46 }
 0x144   : > { %v4277_v32 = vpop.eup %3339  ;;  %3351 = vpow2.f32 %v2932_v50  ;;  %v2934_v50 = vmul.f32 -1.442695, %v4172_v36 }
 0x145   : > { %v4255_v14 = vpop.f32.mrf.mxu2  ;;  %v4262_v37 = vpop.f32.mrf.mxu0  ;;  %v1291_v59 = vmul.f32 %v4277_v32, %v4248_v19  ;;  %3353 = vpow2.f32 %v2933_v1  ;;  %v3049_v1 = vor.u32 %v3203_v29, %v3048_v28  ;;  %vm1296_vm1 = vweird.f32 %v4277_v32 }
 0x146   : > { %5702 = vst [vmem:[#allocation36_spill] sm:$0xff] %v4255_v14  ;;  %v4260_v30 = vpop.f32.mrf.mxu3  ;;  %v4265_v40 = vpop.f32.mrf.mxu1  ;;  %vm4349_vm3 = vmor %vm1295_vm0, %vm1296_vm1 }
 0x147   : > { %5703 = vst [vmem:[#allocation37_spill] sm:$0xff] %v4260_v30  ;;  %v1292_v9 = vsub.f32 1.0, %v1291_v59  ;;  %2095 = vmatpush.bf16.msra.mxu1 %v3049_v1 }
 0x148   : > { %1004 = vmatmul.bf16.gmra.mxu0 %v4115_v47 }
 0x149   : > { %1053 = vmatmul.bf16.gmra.mxu1 %v4117_v48  ;;  %v1293_v6 = vmul.f32 %v4277_v32, %v1292_v9 }
 0x14a   : > { %1102 = vmatmul.bf16.gmra.mxu2 %v4115_v47 }
 0x14b   : > { %1151 = vmatmul.bf16.gmra.mxu3 %v4117_v48  ;;  %v3342_v48 = vpop.eup %3341 }
 0x14c   : > { %v3344_v62 = vpop.eup %3343  ;;  %v4294_v44 = vadd.f32 1.0, %v3342_v48 }
 0x14d   : > { %v4280_v54 = vpop.f32.mrf.mxu2  ;;  %v4285_v58 = vpop.f32.mrf.mxu0  ;;  %v4299_v13 = vadd.f32 1.0, %v3344_v62  ;;  %v1301_v62 = vand.u32 2147483648, %v4248_v19  ;;  %v2978_v19 = vld [vmem:[%s4152_s24 + $0x28] sm:$0xf0] }
 0x14e   : > { %v4283_v55 = vpop.f32.mrf.mxu3  ;;  %5704 = vst [vmem:[#allocation38_spill] sm:$0xff] %v4285_v58  ;;  %v4289_v47 = vpop.f32.mrf.mxu1  ;;  %3355 = vrcp.f32 %v4294_v44  ;;  %v3200_v58 = vld [vmem:[%s4152_s24 + $0xa4] sm:$0xf]  ;;  %vm1340_vm12 = vweird.f32 %v4294_v44 }
 0x14f   : > { %5705 = vst [vmem:[#allocation39_spill] sm:$0xff] %v4289_v47  ;;  %v3346_v63 = vpop.eup %3345  ;;  %3357 = vrcp.f32 %v4299_v13  ;;  %vm1355_vm13 = vweird.f32 %v4299_v13 }
 0x150   : > { %v4292_v3 = vpop.eup %3347  ;;  %v4301_v52 = vadd.f32 1.0, %v3346_v63  ;;  %v2985_v63 = vor.u32 %v3187_v25, %v2984_v23  ;;  %v1329_v25 = vand.u32 2147483647, %v4271_v46 }
 0x151   : > { %v4296_v26 = vpop.eup %3349  ;;  %v1306_v24 = vmul.f32 %v4292_v3, %v4268_v43  ;;  %vm1311_vm6 = vweird.f32 %v4292_v3 }
 0x152   : > { %v3352_v27 = vpop.eup %3351  ;;  %v1321_v42 = vmul.f32 %v4296_v26, %v4271_v46  ;;  %3359 = vrcp.f32 %v4301_v52  ;;  %2046 = vmatpush.bf16.msra.mxu0 %v2985_v63  ;;  %v3184_v63 = vld [vmem:[%s4152_s24 + $0x24] sm:$0xf]  ;;  %vm1326_vm7 = vweird.f32 %v4296_v26  ;;  %vm4394_vm9 = vcmp.eq.f32.partialorder %v1329_v25, 8.507059e+37  ;;  %vm4428_vm10 = vmor %vm1310_vm4, %vm1311_vm6 }
 0x153   : > { %v4323_v48 = vadd.f32 1.0, %v3352_v27  ;;  %v1294_v27 = vadd.f32 %v4277_v32, %v1293_v6  ;;  %3361 = vpow2.f32 %v2934_v50  ;;  %v3354_v23 = vpop.eup %3353  ;;  %v1302_v6 = vor.u32 1.1754944e-38, %v1301_v62  ;;  %v3042_v62 = vld [vmem:[%s4152_s24 + $0xa8] sm:$0xf0]  ;;  %vm4441_vm11 = vmor %vm1325_vm5, %vm1326_vm7 }
 0x154   : > { %v1322_v47 = vsub.f32 1.0, %v1321_v42  ;;  %v4343_v28 = vpop.eup %3355  ;;  %v1331_v42 = vand.u32 2147483648, %v4271_v46  ;;  %v2935_v50 = vmul.f32 -1.442695, %v4181_v51 }
 0x155   : > { %v4304_v53 = vpop.f32.mrf.mxu2  ;;  %v4313_v39 = vpop.f32.mrf.mxu0  ;;  %3363 = vrcp.f32 %v4323_v48  ;;  %v1336_v29 = vmul.f32 %v4343_v28, %v4294_v44  ;;  %vm1341_vm14 = vweird.f32 %v4343_v28 }
 0x156   : > { %5706 = vst [vmem:[#allocation40_spill] sm:$0xff] %v4304_v53  ;;  %v4311_v38 = vpop.f32.mrf.mxu3  ;;  %v4320_v59 = vpop.f32.mrf.mxu1  ;;  %v1316_v53 = vand.u32 2147483648, %v4268_v43  ;;  %v1323_v49 = vmul.f32 %v4296_v26, %v1322_v47  ;;  %v1332_v9 = vor.u32 1.1754944e-38, %v1331_v42 }
 0x157   : > { %5707 = vst [vmem:[#allocation41_spill] sm:$0xff] %v4311_v38  ;;  %v1307_v38 = vsub.f32 1.0, %v1306_v24  ;;  %v2936_v24 = vmul.f32 -1.442695, %v4183_v33  ;;  %v4372_v14 = vpop.eup %3357 }
 0x158   : > { %1009 = vmatmul.bf16.gmra.mxu0 %v4127_v56  ;;  %v4377_v12 = vor.u32 1.1754944e-38, %v1316_v53  ;;  %vm1356_vm0 = vweird.f32 %v4372_v14 }
 0x159   : > { %1058 = vmatmul.bf16.gmra.mxu1 %v4129_v57  ;;  %3365 = vpow2.f32 %v2936_v24  ;;  %v3185_v24 = vld [vmem:[%s4152_s24 + $0x24] sm:$0xf0]  ;;  %vm4551_vm6 = vmor %vm1355_vm13, %vm1356_vm0 }
 0x15a   : > { %1107 = vmatmul.bf16.gmra.mxu2 %v4127_v56  ;;  %v1308_v56 = vmul.f32 %v4292_v3, %v1307_v38  ;;  %v1298_v38 = vsel %vm4349_vm3, %v4277_v32, %v1294_v27  ;;  %v1346_v27 = vand.u32 2147483648, %v4294_v44  ;;  %3367 = vpow2.f32 %v2935_v50  ;;  %vm4527_vm3 = vmor %vm1340_vm12, %vm1341_vm14 }
 0x15b   : > { %1156 = vmatmul.bf16.gmra.mxu3 %v4129_v57  ;;  %v4363_v57 = vadd.f32 %v4265_v40, %v4262_v37  ;;  %v4380_v37 = vadd.f32 1.0, %v3354_v23  ;;  %v2981_v23 = vor.u32 %v3184_v63, %v2978_v19  ;;  %v1303_v11 = vsel %vm4329_vm2, %v1302_v6, %v1298_v38 }
 0x15c   : > { %v1309_v25 = vadd.f32 %v4292_v3, %v1308_v56  ;;  %v1337_v6 = vsub.f32 1.0, %v1336_v29  ;;  %v2977_v50 = vor.u32 %v3185_v24, %v2976_v18  ;;  %v4422_v56 = vmul.f32 %v1303_v11, %v4135_v60 }
 0x15d   : > { %v4356_v1 = vpop.f32.mrf.mxu2  ;;  %5712 = vst [vmem:[#allocation42_spill] sm:$0xff] %v4363_v57  ;;  %v4370_v30 = vpop.f32.mrf.mxu0  ;;  %3369 = vrcp.f32 %v4380_v37  ;;  %2145 = vmatpush.bf16.msra.mxu2 %v2981_v23  ;;  %v1344_v19 = vand.u32 2147483647, %v4294_v44  ;;  %v4446_v43 = vor.u32 1.1754944e-38, %v1346_v27  ;;  %vm1370_vm2 = vweird.f32 %v4301_v52 }
 0x15e   : > { %v4368_v21 = vpop.f32.mrf.mxu3  ;;  %5713 = vst [vmem:[#allocation43_spill] sm:$0xff] %v4370_v30  ;;  %v4382_v40 = vpop.f32.mrf.mxu1  ;;  %v4401_v30 = vadd.f32 %v4283_v55, %v4280_v54  ;;  %v1351_v54 = vmul.f32 %v4372_v14, %v4299_v13  ;;  %3371 = vpow2.f32 %v2937_v41  ;;  %2047 = vmatpush.bf16.msra.mxu0 %v2977_v50  ;;  %v1313_v46 = vsel %vm4428_vm10, %v4292_v3, %v1309_v25 }
 0x15f   : > { %5714 = vst [vmem:[#allocation44_spill] sm:$0xff] %v4382_v40  ;;  %v4384_v57 = vpop.eup %3359  ;;  %v3045_v40 = vor.u32 %v3200_v58, %v3042_v62  ;;  %v1324_v58 = vadd.f32 %v4296_v26, %v1323_v49  ;;  %v3041_v62 = vor.u32 %v3201_v61, %v3040_v7  ;;  %v3182_v7 = vld [vmem:[%s4152_s24 + $0x14] sm:$0xf]  ;;  %v2970_v61 = vld [vmem:[%s4152_s24 + $0x18] sm:$0xf0]  ;;  %v1338_v50 = vmul.f32 %v4343_v28, %v1337_v6 }
 0x160   : > { %v3362_v32 = vpop.eup %3361  ;;  %5719 = vst [vmem:[#allocation45_spill] sm:$0xff] %v4401_v30  ;;  %v1366_v55 = vmul.f32 %v4384_v57, %v4301_v52  ;;  %v1352_v23 = vsub.f32 1.0, %v1351_v54  ;;  %v4469_v3 = vadd.f32 %v4320_v59, %v4313_v39  ;;  %v3198_v54 = vld [vmem:[%s4152_s24 + $0x94] sm:$0xf]  ;;  %v1318_v6 = vsel %vm4390_vm8, %v4377_v12, %v1313_v46 }
 0x161   : > { %v4405_v51 = vpop.eup %3363  ;;  %2194 = vmatpush.bf16.msra.mxu3 %v3045_v40  ;;  %v4419_v63 = vadd.f32 1.0, %v3362_v32  ;;  %v1361_v40 = vand.u32 2147483648, %v4299_v13  ;;  %v1328_v27 = vsel %vm4441_vm11, %v4296_v26, %v1324_v58  ;;  %2096 = vmatpush.bf16.msra.mxu1 %v3041_v62  ;;  %v2973_v58 = vor.u32 %v3182_v7, %v2970_v61 }
 0x162   : > { %v1381_v42 = vmul.f32 %v4405_v51, %v4323_v48  ;;  %v3366_v18 = vpop.eup %3365  ;;  %v1367_v24 = vsub.f32 1.0, %v1366_v55  ;;  %5726 = vst [vmem:[#allocation48_spill] sm:$0xff] %v4469_v3  ;;  %v3034_v55 = vld [vmem:[%s4152_s24 + $0x98] sm:$0xf0]  ;;  %v4479_v62 = vadd.f32 %v4368_v21, %v4356_v1  ;;  %v1333_v39 = vsel %vm4394_vm9, %v1332_v9, %v1328_v27 }
 0x163   : > { %v3368_v11 = vpop.eup %3367  ;;  %3373 = vrcp.f32 %v4419_v63  ;;  %v4473_v26 = vadd.f32 1.0, %v3366_v18  ;;  %vm4487_vm15 = vcmp.eq.f32.partialorder %v1344_v19, 8.507059e+37  ;;  %v1353_v18 = vmul.f32 %v4372_v14, %v1352_v23  ;;  %2146 = vmatpush.bf16.msra.mxu2 %v2973_v58 }
 0x164   : > { %v4471_v25 = vpop.eup %3369  ;;  %v1382_v49 = vsub.f32 1.0, %v1381_v42  ;;  %5727 = vst [vmem:[#allocation49_spill] sm:$0xff] %v4479_v62  ;;  %v1359_v42 = vand.u32 2147483647, %v4299_v13  ;;  %v1368_v21 = vmul.f32 %v4384_v57, %v1367_v24  ;;  %v1374_v1 = vand.u32 2147483647, %v4301_v52 }
 0x165   : > { %v4435_v38 = vpop.f32.mrf.mxu2  ;;  %v4454_v32 = vpop.f32.mrf.mxu0  ;;  %v3037_v47 = vor.u32 %v3198_v54, %v3034_v55  ;;  %v1339_v53 = vadd.f32 %v4343_v28, %v1338_v50  ;;  %v1396_v9 = vmul.f32 %v4471_v25, %v4380_v37  ;;  %v4498_v19 = vadd.f32 1.0, %v3368_v11  ;;  %v3199_v62 = vld [vmem:[%s4152_s24 + $0x94] sm:$0xf0] }
 0x166   : > { %5722 = vst [vmem:[#allocation46_spill] sm:$0xff] %v4435_v38  ;;  %v4452_v29 = vpop.f32.mrf.mxu3  ;;  %v4462_v41 = vpop.f32.mrf.mxu1  ;;  %v4501_v60 = vmul.f32 %v1318_v6, %v4141_v0  ;;  %v1362_v7 = vor.u32 1.1754944e-38, %v1361_v40  ;;  %v1383_v61 = vmul.f32 %v4405_v51, %v1382_v49  ;;  %v4510_v23 = vmul.f32 %v1333_v39, %v4143_v2 }
 0x167   : > { %5725 = vst [vmem:[#allocation47_spill] sm:$0xff] %v4452_v29  ;;  %v2938_v29 = vmul.f32 -1.442695, %v4192_v5  ;;  %v3372_v12 = vpop.eup %3371  ;;  %2195 = vmatpush.bf16.msra.mxu3 %v3037_v47  ;;  %vm4513_vm1 = vcmp.eq.f32.partialorder %v1359_v42, 8.507059e+37  ;;  %v1376_v0 = vand.u32 2147483648, %v4301_v52  ;;  %v1354_v11 = vadd.f32 %v4372_v14, %v1353_v18 }
 0x168   : > { %v1369_v50 = vadd.f32 %v4384_v57, %v1368_v21  ;;  %vm1371_vm4 = vweird.f32 %v4384_v57  ;;  %vm4534_vm5 = vcmp.eq.f32.partialorder %v1374_v1, 8.507059e+37  ;;  %v4538_v58 = vadd.f32 1.0, %v3372_v12  ;;  %v3197_v5 = vld [vmem:[%s4152_s24 + $0x84] sm:$0xf0] }
 0x169   : > { %3375 = vpow2.f32 %v2938_v29  ;;  %v4507_v27 = vpop.eup %3373  ;;  %v1343_v44 = vsel %vm4527_vm3, %v4343_v28, %v1339_v53  ;;  %v1397_v55 = vsub.f32 1.0, %v1396_v9  ;;  %v2940_v6 = vmul.f32 -1.442695, %v4201_v17  ;;  %vm4562_vm8 = vmor %vm1370_vm2, %vm1371_vm4  ;;  %v3024_v17 = vld [vmem:[%s4152_s24 + $0x80] sm:$0xf] }
 0x16a   : > { %3377 = vrcp.f32 %v4473_v26  ;;  %v1384_v42 = vadd.f32 %v4405_v51, %v1383_v61  ;;  %vm1386_vm7 = vweird.f32 %v4405_v51  ;;  %v1411_v28 = vmul.f32 %v4507_v27, %v4419_v63 }
 0x16b   : > { %3379 = vrcp.f32 %v4498_v19  ;;  %v2939_v18 = vmul.f32 -1.442695, %v4199_v16  ;;  %v1377_v13 = vor.u32 1.1754944e-38, %v1376_v0  ;;  %vm1385_vm9 = vweird.f32 %v4323_v48  ;;  %v2968_v0 = vld [vmem:[%s4152_s24 + $0x10] sm:$0xf] }
 0x16c   : > { %v1389_v47 = vand.u32 2147483647, %v4323_v48  ;;  %v1391_v12 = vand.u32 2147483648, %v4323_v48  ;;  %v1348_v9 = vsel %vm4487_vm15, %v4446_v43, %v1343_v44  ;;  %v1358_v52 = vsel %vm4551_vm6, %v4372_v14, %v1354_v11  ;;  %vm4581_vm10 = vmor %vm1385_vm9, %vm1386_vm7  ;;  %v3181_v16 = vld [vmem:[%s4152_s24 + $0x4] sm:$0xf0] }
 0x16d   : > { %v4505_v46 = vpop.f32.mrf.mxu2  ;;  %v4521_v24 = vpop.f32.mrf.mxu0  ;;  %v1373_v61 = vsel %vm4562_vm8, %v4384_v57, %v1369_v50  ;;  %3381 = vrcp.f32 %v4538_v58  ;;  %v1398_v48 = vmul.f32 %v4471_v25, %v1397_v55  ;;  %v1404_v2 = vand.u32 2147483647, %v4380_v37 }
 0x16e   : > { %v4519_v40 = vpop.f32.mrf.mxu3  ;;  %v4540_v54 = vpop.f32.mrf.mxu1  ;;  %v1406_v43 = vand.u32 2147483648, %v4380_v37  ;;  %3383 = vpow2.f32 %v2940_v6  ;;  %v1388_v14 = vsel %vm4581_vm10, %v4405_v51, %v1384_v42  ;;  %v1412_v59 = vsub.f32 1.0, %v1411_v28 }
 0x16f   : > { %v3376_v21 = vpop.eup %3375  ;;  %3385 = vpow2.f32 %v2939_v18  ;;  %vm1390_vm11 = vcmp.eq.f32.partialorder %v1389_v47, 8.507059e+37  ;;  %v1392_v44 = vor.u32 1.1754944e-38, %v1391_v12  ;;  %v2941_v39 = vmul.f32 -1.442695, %v4205_v15 }
 0x170   : > { %v4569_v53 = vpop.eup %3377  ;;  %v4591_v11 = vadd.f32 1.0, %v3376_v21  ;;  %v4605_v51 = vmul.f32 %v1348_v9, %v4147_v8  ;;  %v1363_v42 = vsel %vm4513_vm1, %v1362_v7, %v1358_v52  ;;  %vm1400_vm12 = vweird.f32 %v4380_v37 }
 0x171   : > { %v4595_v50 = vpop.eup %3379  ;;  %v1441_v55 = vmul.f32 %v4569_v53, %v4473_v26  ;;  %vm1401_vm13 = vweird.f32 %v4471_v25  ;;  %v1378_v18 = vsel %vm4534_vm5, %v1377_v13, %v1373_v61  ;;  %v1393_v21 = vsel %vm1390_vm11, %v1392_v44, %v1388_v14  ;;  %v3032_v44 = vld [vmem:[%s4152_s24 + $0x90] sm:$0xf] }
 0x172   : > { %v1399_v47 = vadd.f32 %v4471_v25, %v1398_v48  ;;  %vm4616_vm14 = vcmp.eq.f32.partialorder %v1404_v2, 8.507059e+37  ;;  %v1407_v7 = vor.u32 1.1754944e-38, %v1406_v43  ;;  %v1413_v37 = vmul.f32 %v4507_v27, %v1412_v59  ;;  %vm4626_vm15 = vmor %vm1400_vm12, %vm1401_vm13  ;;  %v3183_v59 = vld [vmem:[%s4152_s24 + $0x14] sm:$0xf0] }
 0x173   : > { %v4620_v8 = vpop.eup %3381  ;;  %v1426_v29 = vmul.f32 %v4595_v50, %v4498_v19  ;;  %3387 = vrcp.f32 %v4591_v11  ;;  %v1419_v9 = vand.u32 2147483647, %v4419_v63  ;;  %v1421_v52 = vand.u32 2147483648, %v4419_v63 }
 0x174   : > { %v3384_v49 = vpop.eup %3383  ;;  %v1442_v61 = vsub.f32 1.0, %v1441_v55  ;;  %3389 = vpow2.f32 %v2941_v39  ;;  %v4634_v2 = vmul.f32 %v1363_v42, %v4149_v10  ;;  %v4637_v43 = vmul.f32 %v1378_v18, %v4161_v20 }
 0x175   : > { %v4593_v57 = vpop.f32.mrf.mxu2  ;;  %v4602_v1 = vpop.f32.mrf.mxu0  ;;  %v4640_v14 = vmul.f32 %v1393_v21, %v4163_v22  ;;  %vm1415_vm0 = vweird.f32 %v4419_v63  ;;  %v1403_v55 = vsel %vm4626_vm15, %v4471_v25, %v1399_v47  ;;  %vm1416_vm1 = vweird.f32 %v4507_v27 }
 0x176   : > { %v4600_v6 = vpop.f32.mrf.mxu3  ;;  %v4611_v28 = vpop.f32.mrf.mxu1  ;;  %v1436_v10 = vand.u32 2147483648, %v4498_v19  ;;  %v1449_v39 = vand.u32 2147483647, %v4473_v26  ;;  %v1414_v20 = vadd.f32 %v4507_v27, %v1413_v37  ;;  %v1427_v42 = vsub.f32 1.0, %v1426_v29  ;;  %vm4682_vm4 = vmor %vm1415_vm0, %vm1416_vm1 }
 0x177   : > { %v3386_v48 = vpop.eup %3385  ;;  %v1456_v22 = vmul.f32 %v4620_v8, %v4538_v58  ;;  %v4655_v18 = vadd.f32 1.0, %v3384_v49  ;;  %v1443_v3 = vmul.f32 %v4569_v53, %v1442_v61  ;;  %v2969_v25 = vor.u32 %v3183_v59, %v2968_v0 }
 0x178   : > { %v4660_v13 = vadd.f32 1.0, %v3386_v48  ;;  %v3033_v47 = vor.u32 %v3199_v62, %v3032_v44  ;;  %vm4668_vm2 = vcmp.eq.f32.partialorder %v1419_v9, 8.507059e+37  ;;  %v1422_v29 = vor.u32 1.1754944e-38, %v1421_v52  ;;  %v3180_v44 = vld [vmem:[%s4152_s24 + $0x4] sm:$0xf] }
 0x179   : > { %v4666_v15 = vpop.eup %3387  ;;  %vm1430_vm3 = vweird.f32 %v4498_v19  ;;  %v1451_v49 = vand.u32 2147483648, %v4473_v26  ;;  %v1408_v0 = vsel %vm4616_vm14, %v1407_v7, %v1403_v55  ;;  %v4687_v48 = vor.u32 1.1754944e-38, %v1436_v10  ;;  %2048 = vmatpush.bf16.msra.mxu0 %v2969_v25  ;;  %v2962_v55 = vld [vmem:[%s4152_s24 + $0x8] sm:$0xf0]  ;;  %v2960_v52 = vld [vmem:[%s4152_s24] sm:$0xf] }
 0x17a   : > { %v3390_v62 = vpop.eup %3389  ;;  %vm4689_vm5 = vcmp.eq.f32.partialorder %v1449_v39, 8.507059e+37  ;;  %2097 = vmatpush.bf16.msra.mxu1 %v3033_v47  ;;  %v1418_v63 = vsel %vm4682_vm4, %v4507_v27, %v1414_v20  ;;  %v1428_v12 = vmul.f32 %v4595_v50, %v1427_v42  ;;  %v1466_v7 = vand.u32 2147483648, %v4538_v58  ;;  %v3196_v27 = vld [vmem:[%s4152_s24 + $0x84] sm:$0xf]  ;;  %v3026_v20 = vld [vmem:[%s4152_s24 + $0x88] sm:$0xf0] }
 0x17b   : > { %5750 = vst [vmem:[#allocation50_spill] sm:$0xff] %v4687_v48  ;;  %3391 = vrcp.f32 %v4655_v18  ;;  %v1444_v10 = vadd.f32 %v4569_v53, %v1443_v3  ;;  %vm1446_vm6 = vweird.f32 %v4569_v53  ;;  %v1457_v39 = vsub.f32 1.0, %v1456_v22 }
 0x17c   : > { %3393 = vrcp.f32 %v4660_v13  ;;  %v1452_v25 = vor.u32 1.1754944e-38, %v1451_v49  ;;  %v1464_v42 = vand.u32 2147483647, %v4538_v58  ;;  %v1471_v47 = vmul.f32 %v4666_v15, %v4591_v11 }
 0x17d   : > { %v4657_v21 = vpop.f32.mrf.mxu2  ;;  %v4664_v30 = vpop.f32.mrf.mxu0  ;;  %v4709_v9 = vadd.f32 1.0, %v3390_v62  ;;  %v4713_v3 = vmul.f32 %v1408_v0, %v4169_v35  ;;  %vm1431_vm7 = vweird.f32 %v4595_v50  ;;  %vm1445_vm8 = vweird.f32 %v4473_v26 }
 0x17e   : > { %v4662_v38 = vpop.f32.mrf.mxu3  ;;  %v4674_v61 = vpop.f32.mrf.mxu1  ;;  %v2965_v22 = vor.u32 %v3180_v44, %v2962_v55  ;;  %v1423_v49 = vsel %vm4668_vm2, %v1422_v29, %v1418_v63  ;;  %v4723_v4 = vadd.f32 %v4595_v50, %v1428_v12  ;;  %vm4727_vm9 = vmor %vm1445_vm8, %vm1446_vm6  ;;  %vm1460_vm10 = vweird.f32 %v4538_v58 }
 0x17f   : > { %v4732_v35 = vor.u32 1.1754944e-38, %v1466_v7  ;;  %v3029_v26 = vor.u32 %v3196_v27, %v3026_v20  ;;  %v1448_v37 = vsel %vm4727_vm9, %v4569_v53, %v1444_v10  ;;  %v1458_v29 = vmul.f32 %v4620_v8, %v1457_v39  ;;  %vm4753_vm11 = vmor %vm1430_vm3, %vm1431_vm7 }
 0x180   : > { %v1025_v63 = vadd.f32 %v4462_v41, %v4454_v32  ;;  %2147 = vmatpush.bf16.msra.mxu2 %v2965_v22  ;;  %v1123_v12 = vadd.f32 %v4519_v40, %v4505_v46  ;;  %v1472_v7 = vsub.f32 1.0, %v1471_v47  ;;  %v1027_v27 = vadd.f32 %v4540_v54, %v4521_v24 }
 0x181   : > { %v4742_v48 = vpop.eup %3391  ;;  %2196 = vmatpush.bf16.msra.mxu3 %v3029_v26  ;;  %v2961_v20 = vor.u32 %v3181_v16, %v2960_v52  ;;  %v3025_v53 = vor.u32 %v3197_v5, %v3024_v17  ;;  %v1778_v32 = vmul.f32 %v1423_v49, %v4172_v36  ;;  %v1481_v46 = vand.u32 2147483648, %v4591_v11  ;;  %v5766_v26 = vld [vmem:[#allocation30_spill] sm:$0xff] }
 0x182   : > { %v4746_v39 = vpop.eup %3393  ;;  %3395 = vrcp.f32 %v4709_v9  ;;  %v1125_v5 = vadd.f32 %v4600_v6, %v4593_v57  ;;  %v1433_v36 = vsel %vm4753_vm11, %v4595_v50, %v4723_v4  ;;  %v1453_v16 = vsel %vm4689_vm5, %v1452_v25, %v1448_v37 }
 0x183   : > { %vm1461_vm12 = vweird.f32 %v4620_v8  ;;  %vm1475_vm13 = vweird.f32 %v4591_v11  ;;  %v1804_v17 = vmul.f32 %v4510_v23, %v1027_v27  ;;  %2049 = vmatpush.bf16.msra.mxu0 %v2961_v20  ;;  %2098 = vmatpush.bf16.msra.mxu1 %v3025_v53  ;;  %v1501_v40 = vmul.f32 %v4742_v48, %v4655_v18  ;;  %v5770_v23 = vld [vmem:[#allocation23_spill] sm:$0xff] }
 0x184   : > { %v1802_v24 = vmul.f32 %v4422_v56, %v1025_v63  ;;  %v1803_v54 = vmul.f32 %v4501_v60, %v1123_v12  ;;  %v1805_v4 = vmul.f32 %v4605_v51, %v1125_v5  ;;  %v5757_v57 = vand.u32 2147483647, %v4498_v19  ;;  %vm4808_vm1 = vmor %vm1460_vm10, %vm1461_vm12 }
 0x185   : > { %v1080_v0 = vpop.f32.mrf.mxu2  ;;  %v985_v55 = vpop.f32.mrf.mxu0  ;;  %v1459_v6 = vadd.f32 %v4620_v8, %v1458_v29  ;;  %vm4782_vm15 = vcmp.eq.f32.partialorder %v1464_v42, 8.507059e+37  ;;  %v1473_v52 = vmul.f32 %v4666_v15, %v1472_v7  ;;  %vm1476_vm0 = vweird.f32 %v4666_v15 }
 0x186   : > { %v1129_v44 = vpop.f32.mrf.mxu3  ;;  %v1034_v10 = vpop.f32.mrf.mxu1  ;;  %vm4777_vm14 = vcmp.eq.f32.partialorder %v5757_v57, 8.507059e+37  ;;  %v1486_v56 = vmul.f32 %v4746_v39, %v4660_v13  ;;  %v4792_v19 = vadd.f32 %v4215_v34, %v4213_v31  ;;  %v1834_v60 = vpack.c.bf16 %v1804_v17, %v1802_v24  ;;  %v5764_v34 = vld [vmem:[#allocation31_spill] sm:$0xff]  ;;  %vm4843_vm2 = vmor %vm1475_vm13, %vm1476_vm0 }
 0x187   : > { %v1835_v51 = vpack.c.bf16 %v1805_v4, %v1803_v54  ;;  %v1030_v59 = vadd.f32 %v4611_v28, %v4602_v1  ;;  %v1780_v25 = vmul.f32 %v1453_v16, %v4183_v33  ;;  %v2942_v42 = vmul.f32 -1.442695, %v4224_v45  ;;  %v5765_v28 = vld [vmem:[#allocation29_spill] sm:$0xff] }
 0x188   : > { %v1128_v47 = vadd.f32 %v4662_v38, %v4657_v21  ;;  %v1032_v22 = vadd.f32 %v4674_v61, %v4664_v30  ;;  %v4802_v62 = vpop.eup %3395  ;;  %v1502_v33 = vsub.f32 1.0, %v1501_v40  ;;  %v2943_v1 = vmul.f32 -1.442695, %v5764_v34  ;;  %2050 = vmatmul.bf16.vlgmr.msra.gmra.mxu0 %v1834_v60  ;;  %2148 = vmatmul.bf16.vlgmr.msra.gmra.mxu2 %v1834_v60 }
 0x189   : > { %v4815_v38 = vadd.f32 %v5766_v26, %v5765_v28  ;;  %v1130_v30 = vadd.f32 %v1129_v44, %v1080_v0  ;;  %v1463_v58 = vsel %vm4808_vm1, %v4620_v8, %v1459_v6  ;;  %v1474_v37 = vadd.f32 %v4666_v15, %v1473_v52  ;;  %2099 = vmatmul.bf16.vlgmr.msra.gmra.mxu1 %v1835_v51 }
 0x18a   : > { %v1487_v29 = vsub.f32 1.0, %v1486_v56  ;;  %2197 = vmatmul.bf16.vlgmr.msra.gmra.mxu3 %v1835_v51  ;;  %v1035_v63 = vadd.f32 %v1034_v10, %v985_v55  ;;  %v2944_v7 = vmul.f32 -1.442695, %v4792_v19  ;;  %v1806_v27 = vmul.f32 %v4634_v2, %v1030_v59  ;;  %v5771_v56 = vld [vmem:[#allocation24_spill] sm:$0xff] }
 0x18b   : > { %v1808_v20 = vmul.f32 %v4640_v14, %v1032_v22  ;;  %v1809_v0 = vmul.f32 %v4713_v3, %v1130_v30  ;;  %v1516_v44 = vmul.f32 %v4802_v62, %v4709_v9  ;;  %3397 = vpow2.f32 %v2942_v42  ;;  %v5767_v3 = vld [vmem:[#allocation50_spill] sm:$0xff] }
 0x18c   : > { %v1807_v8 = vmul.f32 %v4637_v43, %v1128_v47  ;;  %v1503_v41 = vmul.f32 %v4742_v48, %v1502_v33  ;;  %3399 = vpow2.f32 %v2943_v1  ;;  %v2945_v55 = vmul.f32 -1.442695, %v4815_v38 }
 0x18d   : > { %v1083_v49 = vpop.f32.mrf.mxu2  ;;  %v987_v61 = vpop.f32.mrf.mxu0  ;;  %v1836_v10 = vpack.c.bf16 %v1808_v20, %v1806_v27  ;;  %v1479_v5 = vand.u32 2147483647, %v4591_v11  ;;  %v1810_v2 = vmul.f32 %v1778_v32, %v1035_v63  ;;  %v1438_v17 = vsel %vm4777_vm14, %v5767_v3, %v1433_v36  ;;  %v5778_v3 = vld [vmem:[#allocation27_spill] sm:$0xff] }
 0x18e   : > { %v1132_v21 = vpop.f32.mrf.mxu3  ;;  %v1036_v12 = vpop.f32.mrf.mxu1  ;;  %v4831_v16 = vpack.c.bf16 %v1809_v0, %v1807_v8  ;;  %v1468_v43 = vsel %vm4782_vm15, %v4732_v35, %v1463_v58  ;;  %v1482_v32 = vor.u32 1.1754944e-38, %v1481_v46  ;;  %3401 = vpow2.f32 %v2944_v7  ;;  %v5775_v7 = vld [vmem:[#allocation34_spill] sm:$0xff] }
 0x18f   : > { %v1037_v53 = vadd.f32 %v1036_v12, %v987_v61  ;;  %v1478_v36 = vsel %vm4843_vm2, %v4666_v15, %v1474_v37  ;;  %v1517_v24 = vsub.f32 1.0, %v1516_v44  ;;  %v1133_v54 = vadd.f32 %v1132_v21, %v1083_v49 }
 0x190   : > { %v1488_v57 = vmul.f32 %v4746_v39, %v1487_v29  ;;  %v1504_v50 = vadd.f32 %v4742_v48, %v1503_v41  ;;  %vm1506_vm3 = vweird.f32 %v4742_v48  ;;  %3403 = vpow2.f32 %v2945_v55  ;;  %v5774_v29 = vld [vmem:[#allocation25_spill] sm:$0xff] }
 0x191   : > { %v1812_v14 = vmul.f32 %v1780_v25, %v1037_v53  ;;  %v3398_v46 = vpop.eup %3397  ;;  %v1779_v52 = vmul.f32 %v1438_v17, %v5770_v23  ;;  %v1781_v60 = vmul.f32 %v1468_v43, %v5771_v56  ;;  %v1511_v15 = vand.u32 2147483648, %v4655_v18  ;;  %v5782_v43 = vld [vmem:[#allocation33_spill] sm:$0xff] }
 0x192   : > { %v3400_v25 = vpop.eup %3399  ;;  %vm1480_vm4 = vcmp.eq.f32.partialorder %v1479_v5, 8.507059e+37  ;;  %vm1490_vm5 = vweird.f32 %v4660_v13  ;;  %vm1505_vm6 = vweird.f32 %v4655_v18  ;;  %v1509_v42 = vand.u32 2147483647, %v4655_v18 }
 0x193   : > { %v4852_v35 = vpack.c.bf16 %v1812_v14, %v1810_v2  ;;  %v1483_v47 = vsel %vm1480_vm4, %v1482_v32, %v1478_v36  ;;  %vm4865_vm7 = vmor %vm1505_vm6, %vm1506_vm3  ;;  %v1518_v49 = vmul.f32 %v4802_v62, %v1517_v24  ;;  %v1811_v31 = vmul.f32 %v1779_v52, %v1133_v54  ;;  %v5783_v24 = vld [vmem:[#allocation36_spill] sm:$0xff]  ;;  %v5784_v54 = vld [vmem:[#allocation37_spill] sm:$0xff] }
 0x194   : > { %v3402_v1 = vpop.eup %3401  ;;  %v1489_v28 = vadd.f32 %v4746_v39, %v1488_v57  ;;  %vm1491_vm8 = vweird.f32 %v4746_v39  ;;  %v1508_v18 = vsel %vm4865_vm7, %v4742_v48, %v1504_v50  ;;  %v4875_v26 = vadd.f32 1.0, %v3398_v46  ;;  %v5785_v46 = vld [vmem:[#allocation35_spill] sm:$0xff] }
 0x195   : > { %v1085_v4 = vpop.f32.mrf.mxu2  ;;  %v990_v11 = vpop.f32.mrf.mxu0  ;;  %v1494_v30 = vand.u32 2147483647, %v4660_v13  ;;  %v1512_v21 = vor.u32 1.1754944e-38, %v1511_v15  ;;  %v4878_v61 = vadd.f32 1.0, %v3400_v25  ;;  %v1782_v63 = vmul.f32 %v1483_v47, %v5774_v29  ;;  %vm4887_vm10 = vmor %vm1490_vm5, %vm1491_vm8 }
 0x196   : > { %v1134_v6 = vpop.f32.mrf.mxu3  ;;  %v1039_v59 = vpop.f32.mrf.mxu1  ;;  %v1496_v12 = vand.u32 2147483648, %v4660_v13  ;;  %vm1510_vm9 = vcmp.eq.f32.partialorder %v1509_v42, 8.507059e+37  ;;  %v2946_v27 = vmul.f32 -1.442695, %v5775_v7  ;;  %v1519_v0 = vadd.f32 %v4802_v62, %v1518_v49  ;;  %v5786_v42 = vld [vmem:[#allocation26_spill] sm:$0xff] }
 0x197   : > { %v1135_v51 = vadd.f32 %v1134_v6, %v1085_v4  ;;  %v3404_v37 = vpop.eup %3403  ;;  %v1513_v20 = vsel %vm1510_vm9, %v1512_v21, %v1508_v18  ;;  %vm1521_vm11 = vweird.f32 %v4802_v62  ;;  %v4893_v44 = vadd.f32 1.0, %v3402_v1 }
 0x198   : > { %v1493_v8 = vsel %vm4887_vm10, %v4746_v39, %v1489_v28  ;;  %v1526_v53 = vand.u32 2147483648, %v4709_v9  ;;  %3405 = vrcp.f32 %v4875_v26  ;;  %2055 = vmatmul.bf16.gmra.mxu0 %v1836_v10  ;;  %2153 = vmatmul.bf16.gmra.mxu2 %v1836_v10  ;;  %v1040_v13 = vadd.f32 %v1039_v59, %v990_v11 }
 0x199   : > { %v1813_v33 = vmul.f32 %v1781_v60, %v1135_v51  ;;  %vm1520_vm12 = vweird.f32 %v4709_v9  ;;  %v1524_v5 = vand.u32 2147483647, %v4709_v9  ;;  %3407 = vrcp.f32 %v4878_v61  ;;  %2104 = vmatmul.bf16.gmra.mxu1 %v4831_v16  ;;  %v5781_v9 = vld [vmem:[#allocation32_spill] sm:$0xff] }
 0x19a   : > { %v4903_v2 = vadd.f32 1.0, %v3404_v37  ;;  %2202 = vmatmul.bf16.gmra.mxu3 %v4831_v16  ;;  %v1784_v17 = vmul.f32 %v1513_v20, %v5778_v3  ;;  %vm4910_vm13 = vmor %vm1520_vm12, %vm1521_vm11  ;;  %3409 = vpow2.f32 %v2946_v27  ;;  %v4916_v40 = vadd.f32 %v5782_v43, %v5781_v9 }
 0x19b   : > { %v4880_v58 = vpack.c.bf16 %v1813_v33, %v1811_v31  ;;  %v1497_v36 = vor.u32 1.1754944e-38, %v1496_v12  ;;  %v1523_v16 = vsel %vm4910_vm13, %v4802_v62, %v1519_v0  ;;  %3411 = vrcp.f32 %v4893_v44  ;;  %v5787_v33 = vld [vmem:[#allocation28_spill] sm:$0xff] }
 0x19c   : > { %v4924_v4 = vadd.f32 %v5784_v54, %v5783_v24  ;;  %vm1495_vm14 = vcmp.eq.f32.partialorder %v1494_v30, 8.507059e+37  ;;  %v1527_v57 = vor.u32 1.1754944e-38, %v1526_v53  ;;  %v1814_v50 = vmul.f32 %v1782_v63, %v1040_v13 }
 0x19d   : > { %v1088_v41 = vpop.f32.mrf.mxu2  ;;  %v992_v39 = vpop.f32.mrf.mxu0  ;;  %v1498_v11 = vsel %vm1495_vm14, %v1497_v36, %v1493_v8  ;;  %vm1525_vm15 = vcmp.eq.f32.partialorder %v1524_v5, 8.507059e+37  ;;  %3413 = vrcp.f32 %v4903_v2  ;;  %v2947_v23 = vmul.f32 -1.442695, %v5785_v46  ;;  %v5789_v36 = vld [vmem:[#allocation39_spill] sm:$0xff] }
 0x19e   : > { %v1137_v55 = vpop.f32.mrf.mxu3  ;;  %v1041_v14 = vpop.f32.mrf.mxu1  ;;  %v1528_v56 = vsel %vm1525_vm15, %v1527_v57, %v1523_v16  ;;  %v2948_v62 = vmul.f32 -1.442695, %v4916_v40  ;;  %v2949_v51 = vmul.f32 -1.442695, %v4924_v4  ;;  %v1783_v47 = vmul.f32 %v1498_v11, %v5786_v42 }
 0x19f   : > { %v1042_v32 = vadd.f32 %v1041_v14, %v992_v39  ;;  %v4928_v52 = vpop.eup %3405  ;;  %v1138_v59 = vadd.f32 %v1137_v55, %v1088_v41  ;;  %v1785_v1 = vmul.f32 %v1528_v56, %v5787_v33  ;;  %3415 = vpow2.f32 %v2947_v23 }
 0x1a0   : > { %v4933_v15 = vpop.eup %3407  ;;  %v1531_v28 = vmul.f32 %v4928_v52, %v4875_v26  ;;  %3417 = vpow2.f32 %v2948_v62  ;;  %v1539_v55 = vand.u32 2147483647, %v4875_v26  ;;  %vm1535_vm0 = vweird.f32 %v4875_v26 }
 0x1a1   : > { %v1816_v6 = vmul.f32 %v1784_v17, %v1042_v32  ;;  %v3410_v25 = vpop.eup %3409  ;;  %v1546_v30 = vmul.f32 %v4933_v15, %v4878_v61  ;;  %3419 = vpow2.f32 %v2949_v51  ;;  %v1815_v37 = vmul.f32 %v1783_v47, %v1138_v59  ;;  %v5788_v32 = vld [vmem:[#allocation38_spill] sm:$0xff] }
 0x1a2   : > { %v4937_v31 = vpop.eup %3411  ;;  %v4952_v48 = vadd.f32 1.0, %v3410_v25  ;;  %v1532_v20 = vsub.f32 1.0, %v1531_v28  ;;  %v1541_v10 = vand.u32 2147483648, %v4875_v26  ;;  %vm1550_vm1 = vweird.f32 %v4878_v61  ;;  %v5794_v59 = vld [vmem:[#allocation42_spill] sm:$0xff] }
 0x1a3   : > { %v4931_v60 = vpack.c.bf16 %v1816_v6, %v1814_v50  ;;  %v4944_v21 = vpop.eup %3413  ;;  %v1561_v27 = vmul.f32 %v4937_v31, %v4893_v44  ;;  %v1547_v8 = vsub.f32 1.0, %v1546_v30  ;;  %v4977_v16 = vadd.f32 %v5789_v36, %v5788_v32  ;;  %v5790_v50 = vld [vmem:[#allocation40_spill] sm:$0xff]  ;;  %v5791_v6 = vld [vmem:[#allocation41_spill] sm:$0xff] }
 0x1a4   : > { %v1576_v53 = vmul.f32 %v4944_v21, %v4903_v2  ;;  %3421 = vrcp.f32 %v4952_v48  ;;  %v1533_v17 = vmul.f32 %v4928_v52, %v1532_v20  ;;  %v1554_v24 = vand.u32 2147483647, %v4878_v61 }
 0x1a5   : > { %v1090_v22 = vpop.f32.mrf.mxu2  ;;  %v4946_v63 = vpop.f32.mrf.mxu0  ;;  %v1562_v5 = vsub.f32 1.0, %v1561_v27  ;;  %v1548_v9 = vmul.f32 %v4933_v15, %v1547_v8  ;;  %v1556_v54 = vand.u32 2147483648, %v4878_v61  ;;  %v4985_v11 = vadd.f32 %v5791_v6, %v5790_v50  ;;  %v5797_v27 = vld [vmem:[#allocation45_spill] sm:$0xff] }
 0x1a6   : > { %v1139_v49 = vpop.f32.mrf.mxu3  ;;  %v4948_v12 = vpop.f32.mrf.mxu1  ;;  %vm4987_vm2 = vcmp.eq.f32.partialorder %v1539_v55, 8.507059e+37  ;;  %vm1565_vm3 = vweird.f32 %v4893_v44  ;;  %v1569_v56 = vand.u32 2147483647, %v4893_v44  ;;  %v1534_v51 = vadd.f32 %v4928_v52, %v1533_v17 }
 0x1a7   : > { %v1140_v18 = vadd.f32 %v1139_v49, %v1090_v22  ;;  %v3416_v13 = vpop.eup %3415  ;;  %v1563_v23 = vmul.f32 %v4937_v31, %v1562_v5  ;;  %vm1536_vm4 = vweird.f32 %v4928_v52  ;;  %vm1551_vm5 = vweird.f32 %v4933_v15 }
 0x1a8   : > { %v3418_v41 = vpop.eup %3417  ;;  %2060 = vmatmul.bf16.gmra.mxu0 %v4852_v35  ;;  %2158 = vmatmul.bf16.gmra.mxu2 %v4852_v35  ;;  %v1577_v35 = vsub.f32 1.0, %v1576_v53  ;;  %v4973_v43 = vadd.f32 1.0, %v3416_v13  ;;  %v2950_v25 = vmul.f32 -1.442695, %v5794_v59  ;;  %v1549_v49 = vadd.f32 %v4933_v15, %v1548_v9  ;;  %vm5016_vm6 = vmor %vm1535_vm0, %vm1536_vm4 }
 0x1a9   : > { %v1817_v29 = vmul.f32 %v1785_v1, %v1140_v18  ;;  %v3420_v3 = vpop.eup %3419  ;;  %2109 = vmatmul.bf16.gmra.mxu1 %v4880_v58  ;;  %v4981_v57 = vadd.f32 1.0, %v3418_v41  ;;  %v2952_v1 = vmul.f32 -1.442695, %v4977_v16  ;;  %v1571_v28 = vand.u32 2147483648, %v4893_v44  ;;  %vm5032_vm8 = vmor %vm1550_vm1, %vm1551_vm5 }
 0x1aa   : > { %2207 = vmatmul.bf16.gmra.mxu3 %v4880_v58  ;;  %v4994_v62 = vadd.f32 1.0, %v3420_v3  ;;  %v5004_v22 = vpop.eup %3421  ;;  %v1578_v33 = vmul.f32 %v4944_v21, %v1577_v35  ;;  %3423 = vrcp.f32 %v4973_v43  ;;  %v1584_v18 = vand.u32 2147483647, %v4903_v2 }
 0x1ab   : > { %v4954_v0 = vpack.c.bf16 %v1817_v29, %v1815_v37  ;;  %3425 = vrcp.f32 %v4981_v57  ;;  %v2953_v30 = vmul.f32 -1.442695, %v4985_v11  ;;  %v1564_v29 = vadd.f32 %v4937_v31, %v1563_v23 }
 0x1ac   : > { %vm1566_vm7 = vweird.f32 %v4937_v31  ;;  %3427 = vrcp.f32 %v4994_v62  ;;  %v2951_v20 = vmul.f32 -1.442695, %v5797_v27  ;;  %vm1581_vm9 = vweird.f32 %v4944_v21 }
 0x1ad   : > { %v4962_v39 = vpop.f32.mrf.mxu2  ;;  %v5000_v42 = vpop.f32.mrf.mxu0  ;;  %v1586_v13 = vand.u32 2147483648, %v4903_v2  ;;  %v1591_v41 = vmul.f32 %v5004_v22, %v4952_v48  ;;  %3429 = vpow2.f32 %v2950_v25  ;;  %v1538_v55 = vsel %vm5016_vm6, %v4928_v52, %v1534_v51  ;;  %vm5051_vm11 = vmor %vm1565_vm3, %vm1566_vm7 }
 0x1ae   : > { %v4964_v14 = vpop.f32.mrf.mxu3  ;;  %v5002_v47 = vpop.f32.mrf.mxu1  ;;  %v1553_v61 = vsel %vm5032_vm8, %v4933_v15, %v1549_v49  ;;  %v1579_v5 = vadd.f32 %v4944_v21, %v1578_v33  ;;  %3431 = vpow2.f32 %v2952_v1  ;;  %v1542_v3 = vor.u32 1.1754944e-38, %v1541_v10 }
 0x1af   : > { %vm1555_vm10 = vcmp.eq.f32.partialorder %v1554_v24, 8.507059e+37  ;;  %v1557_v17 = vor.u32 1.1754944e-38, %v1556_v54  ;;  %3433 = vpow2.f32 %v2953_v30  ;;  %v1568_v15 = vsel %vm5051_vm11, %v4937_v31, %v1564_v29 }
 0x1b0   : > { %v5055_v52 = vpop.eup %3423  ;;  %vm1580_vm12 = vweird.f32 %v4903_v2  ;;  %v1601_v10 = vand.u32 2147483648, %v4952_v48  ;;  %3435 = vpow2.f32 %v2951_v20  ;;  %v1543_v44 = vsel %vm4987_vm2, %v1542_v3, %v1538_v55  ;;  %v5806_v55 = vld [vmem:[#allocation43_spill] sm:$0xff] }
 0x1b1   : > { %v5062_v35 = vpop.eup %3425  ;;  %v1558_v32 = vsel %vm1555_vm10, %v1557_v17, %v1553_v61  ;;  %v1572_v36 = vor.u32 1.1754944e-38, %v1571_v28  ;;  %vm5068_vm13 = vmor %vm1580_vm12, %vm1581_vm9  ;;  %v1592_v54 = vsub.f32 1.0, %v1591_v41  ;;  %vm1570_vm14 = vcmp.eq.f32.partialorder %v1569_v56, 8.507059e+37  ;;  %v5807_v61 = vld [vmem:[#allocation44_spill] sm:$0xff] }
 0x1b2   : > { %v5072_v31 = vpop.eup %3427  ;;  %v1583_v2 = vsel %vm5068_vm13, %v4944_v21, %v1579_v5  ;;  %vm5077_vm15 = vcmp.eq.f32.partialorder %v1584_v18, 8.507059e+37  ;;  %v1587_v6 = vor.u32 1.1754944e-38, %v1586_v13  ;;  %vm1595_vm0 = vweird.f32 %v4952_v48 }
 0x1b3   : > { %v3430_v58 = vpop.eup %3429  ;;  %v1573_v23 = vsel %vm1570_vm14, %v1572_v36, %v1568_v15  ;;  %v1599_v51 = vand.u32 2147483647, %v4952_v48  ;;  %v1606_v25 = vmul.f32 %v5055_v52, %v4973_v43  ;;  %v1786_v21 = vmul.f32 %v1543_v44, %v4224_v45  ;;  %v5808_v15 = vld [vmem:[#allocation46_spill] sm:$0xff] }
 0x1b4   : > { %v3432_v33 = vpop.eup %3431  ;;  %v1787_v1 = vmul.f32 %v1558_v32, %v5764_v34  ;;  %v5091_v28 = vor.u32 1.1754944e-38, %v1601_v10  ;;  %v1621_v18 = vmul.f32 %v5062_v35, %v4981_v57  ;;  %v1588_v20 = vsel %vm5077_vm15, %v1587_v6, %v1583_v2  ;;  %v5809_v10 = vld [vmem:[#allocation47_spill] sm:$0xff] }
 0x1b5   : > { %v5024_v8 = vpop.f32.mrf.mxu2  ;;  %v5085_v49 = vpop.f32.mrf.mxu0  ;;  %v1593_v45 = vmul.f32 %v5004_v22, %v1592_v54  ;;  %vm1596_vm1 = vweird.f32 %v5004_v22  ;;  %v1636_v34 = vmul.f32 %v5072_v31, %v4994_v62  ;;  %v1788_v26 = vmul.f32 %v1573_v23, %v4792_v19 }
 0x1b6   : > { %v5026_v53 = vpop.f32.mrf.mxu3  ;;  %v5087_v56 = vpop.f32.mrf.mxu1  ;;  %v1614_v13 = vand.u32 2147483647, %v4973_v43  ;;  %v5111_v41 = vadd.f32 1.0, %v3430_v58  ;;  %v5115_v5 = vadd.f32 %v5807_v61, %v5806_v55  ;;  %v1607_v3 = vsub.f32 1.0, %v1606_v25  ;;  %vm5152_vm3 = vmor %vm1595_vm0, %vm1596_vm1 }
 0x1b7   : > { %v3434_v29 = vpop.eup %3433  ;;  %v1616_v17 = vand.u32 2147483648, %v4973_v43  ;;  %v5118_v9 = vadd.f32 1.0, %v3432_v33  ;;  %v5122_v44 = vadd.f32 %v5809_v10, %v5808_v15  ;;  %v1622_v19 = vsub.f32 1.0, %v1621_v18 }
 0x1b8   : > { %2065 = vmatmul.bf16.gmra.mxu0 %v4931_v60  ;;  %2163 = vmatmul.bf16.gmra.mxu2 %v4931_v60  ;;  %v3436_v60 = vpop.eup %3435  ;;  %v5125_v32 = vadd.f32 1.0, %v3434_v29  ;;  %v1047_v36 = vadd.f32 %v5002_v47, %v5000_v42  ;;  %v1594_v24 = vadd.f32 %v5004_v22, %v1593_v45  ;;  %vm1610_vm2 = vweird.f32 %v4973_v43 }
 0x1b9   : > { %2114 = vmatmul.bf16.gmra.mxu1 %v4954_v0  ;;  %v1637_v54 = vsub.f32 1.0, %v1636_v34  ;;  %v5131_v2 = vadd.f32 1.0, %v3436_v60  ;;  %v1145_v50 = vadd.f32 %v5026_v53, %v5024_v8  ;;  %v1629_v6 = vand.u32 2147483647, %v4981_v57  ;;  %v5810_v53 = vld [vmem:[#allocation48_spill] sm:$0xff] }
 0x1ba   : > { %2212 = vmatmul.bf16.gmra.mxu3 %v4954_v0  ;;  %v1789_v0 = vmul.f32 %v1588_v20, %v4815_v38  ;;  %3437 = vrcp.f32 %v5111_v41  ;;  %v2956_v38 = vmul.f32 -1.442695, %v5115_v5  ;;  %v1045_v58 = vadd.f32 %v4948_v12, %v4946_v63 }
 0x1bb   : > { %v1608_v42 = vmul.f32 %v5055_v52, %v1607_v3  ;;  %3439 = vrcp.f32 %v5118_v9  ;;  %v2957_v47 = vmul.f32 -1.442695, %v5122_v44  ;;  %v1143_v23 = vadd.f32 %v4964_v14, %v4962_v39  ;;  %v5813_v39 = vld [vmem:[#allocation49_spill] sm:$0xff] }
 0x1bc   : > { %v1623_v8 = vmul.f32 %v5062_v35, %v1622_v19  ;;  %3441 = vrcp.f32 %v5125_v32  ;;  %v2954_v25 = vmul.f32 -1.442695, %v5810_v53  ;;  %v1820_v33 = vmul.f32 %v1788_v26, %v1047_v36 }
 0x1bd   : > { %v5097_v30 = vpop.f32.mrf.mxu2  ;;  %v1638_v12 = vmul.f32 %v5072_v31, %v1637_v54  ;;  %3443 = vrcp.f32 %v5131_v2  ;;  %v2955_v14 = vmul.f32 -1.442695, %v5813_v39  ;;  %v1821_v18 = vmul.f32 %v1789_v0, %v1145_v50  ;;  %v5159_v29 = vpop.f32.mrf.mxu0 }
 0x1be   : > { %v5099_v37 = vpop.f32.mrf.mxu3  ;;  %v1051_v20 = vpop.f32.mrf.mxu1  ;;  %v1598_v45 = vsel %vm5152_vm3, %v5004_v22, %v1594_v24  ;;  %v1631_v34 = vand.u32 2147483648, %v4981_v57  ;;  %3445 = vpow2.f32 %v2956_v38  ;;  %v1818_v60 = vmul.f32 %v1786_v21, %v1045_v58 }
 0x1bf   : > { %vm1611_vm4 = vweird.f32 %v5055_v52  ;;  %vm1626_vm5 = vweird.f32 %v5062_v35  ;;  %3447 = vpow2.f32 %v2957_v47  ;;  %v1819_v61 = vmul.f32 %v1787_v1, %v1143_v23 }
 0x1c0   : > { %v5169_v3 = vpop.eup %3437  ;;  %v1609_v15 = vadd.f32 %v5055_v52, %v1608_v42  ;;  %v1624_v10 = vadd.f32 %v5062_v35, %v1623_v8  ;;  %3449 = vpow2.f32 %v2954_v25  ;;  %v1842_v22 = vpack.c.bf16 %v1820_v33, %v1818_v60  ;;  %vm5185_vm8 = vmor %vm1610_vm2, %vm1611_vm4 }
 0x1c1   : > { %v5173_v0 = vpop.eup %3439  ;;  %v1639_v21 = vadd.f32 %v5072_v31, %v1638_v12  ;;  %vm1641_vm6 = vweird.f32 %v5072_v31  ;;  %3451 = vpow2.f32 %v2955_v14  ;;  %v1843_v19 = vpack.c.bf16 %v1821_v18, %v1819_v61 }
 0x1c2   : > { %v5177_v36 = vpop.eup %3441  ;;  %vm1600_vm7 = vcmp.eq.f32.partialorder %v1599_v51, 8.507059e+37  ;;  %vm1625_vm9 = vweird.f32 %v4981_v57  ;;  %v1644_v24 = vand.u32 2147483647, %v4994_v62  ;;  %v1646_v54 = vand.u32 2147483648, %v4994_v62 }
 0x1c3   : > { %v5192_v50 = vpop.eup %3443  ;;  %v1603_v38 = vsel %vm1600_vm7, %v5091_v28, %v1598_v45  ;;  %vm5197_vm10 = vcmp.eq.f32.partialorder %v1614_v13, 8.507059e+37  ;;  %vm5203_vm11 = vmor %vm1625_vm9, %vm1626_vm5  ;;  %vm1640_vm12 = vweird.f32 %v4994_v62  ;;  %v1613_v58 = vsel %vm5185_vm8, %v5055_v52, %v1609_v15 }
 0x1c4   : > { %v3446_v57 = vpop.eup %3445  ;;  %v1617_v28 = vor.u32 1.1754944e-38, %v1616_v17  ;;  %v1628_v13 = vsel %vm5203_vm11, %v5062_v35, %v1624_v10  ;;  %vm5218_vm13 = vmor %vm1640_vm12, %vm1641_vm6  ;;  %v1681_v62 = vmul.f32 %v5173_v0, %v5118_v9  ;;  %vm1630_vm14 = vcmp.eq.f32.partialorder %v1629_v6, 8.507059e+37 }
 0x1c5   : > { %v5165_v26 = vpop.f32.mrf.mxu2  ;;  %v3448_v47 = vpop.eup %3447  ;;  %v1632_v52 = vor.u32 1.1754944e-38, %v1631_v34  ;;  %v1643_v43 = vsel %vm5218_vm13, %v5072_v31, %v1639_v21  ;;  %v1696_v35 = vmul.f32 %v5177_v36, %v5125_v32  ;;  %v1790_v23 = vmul.f32 %v1603_v38, %v5775_v7 }
 0x1c6   : > { %v1149_v55 = vpop.f32.mrf.mxu3  ;;  %v3450_v17 = vpop.eup %3449  ;;  %vm1645_vm15 = vcmp.eq.f32.partialorder %v1644_v24, 8.507059e+37  ;;  %v1647_v8 = vor.u32 1.1754944e-38, %v1646_v54  ;;  %v1651_v25 = vmul.f32 %v5169_v3, %v5111_v41  ;;  %v1618_v6 = vsel %vm5197_vm10, %v1617_v28, %v1613_v58 }
 0x1c7   : > { %v3452_v33 = vpop.eup %3451  ;;  %v1633_v63 = vsel %vm1630_vm14, %v1632_v52, %v1628_v13  ;;  %v1666_v31 = vmul.f32 %v5192_v50, %v5131_v2  ;;  %v5236_v12 = vadd.f32 1.0, %v3446_v57  ;;  %v5238_v14 = vpop.f32.mrf.mxu0  ;;  %v1682_v45 = vsub.f32 1.0, %v1681_v62 }
 0x1c8   : > { %2070 = vmatmul.bf16.gmra.mxu0 %v1842_v22  ;;  %2168 = vmatmul.bf16.gmra.mxu2 %v1842_v22  ;;  %v5240_v18 = vpop.f32.mrf.mxu1  ;;  %v1648_v7 = vsel %vm1645_vm15, %v1647_v8, %v1643_v43  ;;  %v5242_v34 = vadd.f32 1.0, %v3448_v47  ;;  %v1052_v60 = vadd.f32 %v1051_v20, %v5159_v29  ;;  %v1661_v10 = vand.u32 2147483648, %v5111_v41 }
 0x1c9   : > { %2119 = vmatmul.bf16.gmra.mxu1 %v1843_v19  ;;  %v1697_v22 = vsub.f32 1.0, %v1696_v35  ;;  %v5250_v21 = vadd.f32 1.0, %v3450_v17  ;;  %v1792_v1 = vmul.f32 %v1633_v63, %v4916_v40  ;;  %v1652_v24 = vsub.f32 1.0, %v1651_v25 }
 0x1ca   : > { %2217 = vmatmul.bf16.gmra.mxu3 %v1843_v19  ;;  %v1150_v19 = vadd.f32 %v1149_v55, %v5165_v26  ;;  %v5254_v54 = vadd.f32 1.0, %v3452_v33  ;;  %v1050_v38 = vadd.f32 %v5087_v56, %v5085_v49  ;;  %v1793_v29 = vmul.f32 %v1648_v7, %v4924_v4 }
 0x1cb   : > { %v1667_v20 = vsub.f32 1.0, %v1666_v31  ;;  %3453 = vrcp.f32 %v5236_v12  ;;  %v1148_v48 = vadd.f32 %v5099_v37, %v5097_v30  ;;  %v1659_v51 = vand.u32 2147483647, %v5111_v41 }
 0x1cc   : > { %v1683_v26 = vmul.f32 %v5173_v0, %v1682_v45  ;;  %3455 = vrcp.f32 %v5242_v34  ;;  %v1824_v40 = vmul.f32 %v1792_v1, %v1052_v60  ;;  %v1791_v55 = vmul.f32 %v1618_v6, %v5785_v46 }
 0x1cd   : > { %v5245_v61 = vpop.f32.mrf.mxu2  ;;  %v1698_v57 = vmul.f32 %v5177_v36, %v1697_v22  ;;  %3457 = vrcp.f32 %v5250_v21  ;;  %v1825_v4 = vmul.f32 %v1793_v29, %v1150_v19  ;;  %v1653_v49 = vmul.f32 %v5169_v3, %v1652_v24 }
 0x1ce   : > { %v5247_v15 = vpop.f32.mrf.mxu3  ;;  %3459 = vrcp.f32 %v5254_v54  ;;  %v1822_v56 = vmul.f32 %v1790_v23, %v1050_v38  ;;  %vm1655_vm0 = vweird.f32 %v5111_v41  ;;  %v1662_v30 = vor.u32 1.1754944e-38, %v1661_v10 }
 0x1cf   : > { %v1668_v37 = vmul.f32 %v5192_v50, %v1667_v20  ;;  %v1823_v58 = vmul.f32 %v1791_v55, %v1148_v48  ;;  %vm5272_vm1 = vcmp.eq.f32.partialorder %v1659_v51, 8.507059e+37  ;;  %v1684_v46 = vadd.f32 %v5173_v0, %v1683_v26  ;;  %v1007_v43 = vpop.f32.mrf.mxu0 }
 0x1d0   : > { %vm1685_vm2 = vweird.f32 %v5118_v9  ;;  %vm1686_vm3 = vweird.f32 %v5173_v0  ;;  %v1844_v13 = vpack.c.bf16 %v1824_v40, %v1822_v56  ;;  %v1691_v62 = vand.u32 2147483648, %v5118_v9  ;;  %v1056_v35 = vpop.f32.mrf.mxu1 }
 0x1d1   : > { %v5279_v42 = vpop.eup %3453  ;;  %v1699_v47 = vadd.f32 %v5177_v36, %v1698_v57  ;;  %vm1701_vm4 = vweird.f32 %v5177_v36  ;;  %v1845_v52 = vpack.c.bf16 %v1825_v4, %v1823_v58  ;;  %v1654_v23 = vadd.f32 %v5169_v3, %v1653_v49  ;;  %vm5298_vm7 = vmor %vm1685_vm2, %vm1686_vm3 }
 0x1d2   : > { %v5284_v17 = vpop.eup %3455  ;;  %vm1656_vm5 = vweird.f32 %v5169_v3  ;;  %v1689_v8 = vand.u32 2147483647, %v5118_v9  ;;  %v1706_v25 = vand.u32 2147483648, %v5125_v32  ;;  %v1669_v31 = vadd.f32 %v5192_v50, %v1668_v37 }
 0x1d3   : > { %v5290_v63 = vpop.eup %3457  ;;  %vm1671_vm6 = vweird.f32 %v5192_v50  ;;  %vm1700_vm8 = vweird.f32 %v5125_v32  ;;  %v1704_v45 = vand.u32 2147483647, %v5125_v32  ;;  %vm1670_vm9 = vweird.f32 %v5131_v2  ;;  %vm5323_vm11 = vmor %vm1655_vm0, %vm1656_vm5 }
 0x1d4   : > { %v5304_v60 = vpop.eup %3459  ;;  %v1676_v10 = vand.u32 2147483648, %v5131_v2  ;;  %v1688_v22 = vsel %vm5298_vm7, %v5173_v0, %v1684_v46  ;;  %vm5313_vm10 = vmor %vm1700_vm8, %vm1701_vm4  ;;  %v1741_v19 = vmul.f32 %v5279_v42, %v5236_v12  ;;  %v1674_v0 = vand.u32 2147483647, %v5131_v2 }
 0x1d5   : > { %v1105_v33 = vpop.f32.mrf.mxu2  ;;  %v1692_v1 = vor.u32 1.1754944e-38, %v1691_v62  ;;  %v1703_v24 = vsel %vm5313_vm10, %v5177_v36, %v1699_v47  ;;  %v1756_v38 = vmul.f32 %v5284_v17, %v5242_v34  ;;  %v1658_v41 = vsel %vm5323_vm11, %v5169_v3, %v1654_v23  ;;  %vm5340_vm12 = vmor %vm1670_vm9, %vm1671_vm6 }
 0x1d6   : > { %v1154_v6 = vpop.f32.mrf.mxu3  ;;  %vm1690_vm13 = vcmp.eq.f32.partialorder %v1689_v8, 8.507059e+37  ;;  %v1707_v20 = vor.u32 1.1754944e-38, %v1706_v25  ;;  %v1711_v36 = vmul.f32 %v5290_v63, %v5250_v21  ;;  %v1673_v48 = vsel %vm5340_vm12, %v5192_v50, %v1669_v31 }
 0x1d7   : > { %v1693_v51 = vsel %vm1690_vm13, %v1692_v1, %v1688_v22  ;;  %vm1705_vm14 = vcmp.eq.f32.partialorder %v1704_v45, 8.507059e+37  ;;  %v1726_v3 = vmul.f32 %v5304_v60, %v5254_v54  ;;  %v1677_v26 = vor.u32 1.1754944e-38, %v1676_v10  ;;  %v5359_v47 = vpop.f32.mrf.mxu0 }
 0x1d8   : > { %2075 = vmatmul.bf16.gmra.mxu0 %v1844_v13  ;;  %2173 = vmatmul.bf16.gmra.mxu2 %v1844_v13  ;;  %v1708_v2 = vsel %vm1705_vm14, %v1707_v20, %v1703_v24  ;;  %v1742_v40 = vsub.f32 1.0, %v1741_v19  ;;  %v1057_v55 = vadd.f32 %v1056_v35, %v1007_v43  ;;  %v1663_v57 = vsel %vm5272_vm1, %v1662_v30, %v1658_v41  ;;  %v5361_v28 = vpop.f32.mrf.mxu1 }
 0x1d9   : > { %2124 = vmatmul.bf16.gmra.mxu1 %v1845_v52  ;;  %vm1675_vm15 = vcmp.eq.f32.partialorder %v1674_v0, 8.507059e+37  ;;  %v1757_v4 = vsub.f32 1.0, %v1756_v38  ;;  %v1155_v49 = vadd.f32 %v1154_v6, %v1105_v33  ;;  %v1796_v37 = vmul.f32 %v1693_v51, %v4977_v16 }
 0x1da   : > { %2222 = vmatmul.bf16.gmra.mxu3 %v1845_v52  ;;  %v1678_v56 = vsel %vm1675_vm15, %v1677_v26, %v1673_v48  ;;  %v1712_v58 = vsub.f32 1.0, %v1711_v36  ;;  %v1055_v50 = vadd.f32 %v5240_v18, %v5238_v14  ;;  %v1797_v46 = vmul.f32 %v1708_v2, %v4985_v11 }
 0x1db   : > { %v1727_v13 = vsub.f32 1.0, %v1726_v3  ;;  %v1153_v62 = vadd.f32 %v5247_v15, %v5245_v61  ;;  %v1794_v30 = vmul.f32 %v1663_v57, %v5794_v59  ;;  %v1743_v52 = vmul.f32 %v5279_v42, %v1742_v40 }
 0x1dc   : > { %v1828_v43 = vmul.f32 %v1796_v37, %v1057_v55  ;;  %v1795_v14 = vmul.f32 %v1678_v56, %v5797_v27  ;;  %v1758_v11 = vmul.f32 %v5284_v17, %v1757_v4  ;;  %v1829_v18 = vmul.f32 %v1797_v46, %v1155_v49 }
 0x1dd   : > { %v5365_v16 = vpop.f32.mrf.mxu2  ;;  %v1713_v61 = vmul.f32 %v5290_v63, %v1712_v58  ;;  %v1826_v15 = vmul.f32 %v1794_v30, %v1055_v50  ;;  %vm1715_vm0 = vweird.f32 %v5250_v21  ;;  %v1721_v23 = vand.u32 2147483648, %v5250_v21 }
 0x1de   : > { %v5367_v35 = vpop.f32.mrf.mxu3  ;;  %v1728_v59 = vmul.f32 %v5304_v60, %v1727_v13  ;;  %v1827_v8 = vmul.f32 %v1795_v14, %v1153_v62  ;;  %vm1716_vm1 = vweird.f32 %v5290_v63  ;;  %v1744_v25 = vadd.f32 %v5279_v42, %v1743_v52 }
 0x1df   : > { %vm1746_vm2 = vweird.f32 %v5279_v42  ;;  %v1846_v27 = vpack.c.bf16 %v1828_v43, %v1826_v15  ;;  %v1751_v33 = vand.u32 2147483648, %v5236_v12  ;;  %v1759_v6 = vadd.f32 %v5284_v17, %v1758_v11  ;;  %vm5406_vm9 = vmor %vm1715_vm0, %vm1716_vm1  ;;  %v1012_v41 = vpop.f32.mrf.mxu0 }
 0x1e0   : > { %vm1761_vm3 = vweird.f32 %v5284_v17  ;;  %v1847_v31 = vpack.c.bf16 %v1829_v18, %v1827_v8  ;;  %v1714_v7 = vadd.f32 %v5290_v63, %v1713_v61  ;;  %vm1745_vm4 = vweird.f32 %v5236_v12  ;;  %v1061_v29 = vpop.f32.mrf.mxu1 }
 0x1e1   : > { %v1749_v45 = vand.u32 2147483647, %v5236_v12  ;;  %v1766_v10 = vand.u32 2147483648, %v5242_v34  ;;  %v1729_v22 = vadd.f32 %v5304_v60, %v1728_v59  ;;  %vm1731_vm5 = vweird.f32 %v5304_v60  ;;  %vm5387_vm6 = vmor %vm1745_vm4, %vm1746_vm2 }
 0x1e2   : > { %vm1760_vm7 = vweird.f32 %v5242_v34  ;;  %v1764_v19 = vand.u32 2147483647, %v5242_v34  ;;  %v1719_v32 = vand.u32 2147483647, %v5250_v21  ;;  %v1736_v0 = vand.u32 2147483648, %v5254_v54 }
 0x1e3   : > { %v1748_v12 = vsel %vm5387_vm6, %v5279_v42, %v1744_v25  ;;  %vm5398_vm8 = vmor %vm1760_vm7, %vm1761_vm3  ;;  %vm1730_vm10 = vweird.f32 %v5254_v54  ;;  %v1734_v24 = vand.u32 2147483647, %v5254_v54  ;;  %v1752_v38 = vor.u32 1.1754944e-38, %v1751_v33 }
 0x1e4   : > { %v1763_v42 = vsel %vm5398_vm8, %v5284_v17, %v1759_v6  ;;  %v1718_v21 = vsel %vm5406_vm9, %v5290_v63, %v1714_v7  ;;  %vm5420_vm11 = vmor %vm1730_vm10, %vm1731_vm5  ;;  %vm1750_vm12 = vcmp.eq.f32.partialorder %v1749_v45, 8.507059e+37  ;;  %v1767_v54 = vor.u32 1.1754944e-38, %v1766_v10 }
 0x1e5   : > { %v1110_v36 = vpop.f32.mrf.mxu2  ;;  %v1722_v51 = vor.u32 1.1754944e-38, %v1721_v23  ;;  %v1733_v17 = vsel %vm5420_vm11, %v5304_v60, %v1729_v22  ;;  %v1753_v3 = vsel %vm1750_vm12, %v1752_v38, %v1748_v12  ;;  %vm1765_vm13 = vcmp.eq.f32.partialorder %v1764_v19, 8.507059e+37 }
 0x1e6   : > { %v1159_v48 = vpop.f32.mrf.mxu3  ;;  %vm1720_vm14 = vcmp.eq.f32.partialorder %v1719_v32, 8.507059e+37  ;;  %v1737_v26 = vor.u32 1.1754944e-38, %v1736_v0  ;;  %v1768_v63 = vsel %vm1765_vm13, %v1767_v54, %v1763_v42  ;;  %v1062_v2 = vadd.f32 %v1061_v29, %v1012_v41 }
 0x1e7   : > { %v1723_v40 = vsel %vm1720_vm14, %v1722_v51, %v1718_v21  ;;  %vm1735_vm15 = vcmp.eq.f32.partialorder %v1734_v24, 8.507059e+37  ;;  %v1160_v55 = vadd.f32 %v1159_v48, %v1110_v36  ;;  %v1800_v4 = vmul.f32 %v1753_v3, %v5115_v5 }
 0x1e8   : > { %2080 = vmatmul.bf16.gmra.mxu0 %v1846_v27  ;;  %2178 = vmatmul.bf16.gmra.mxu2 %v1846_v27  ;;  %v1738_v57 = vsel %vm1735_vm15, %v1737_v26, %v1733_v17  ;;  %v1060_v49 = vadd.f32 %v5361_v28, %v5359_v47  ;;  %v1801_v56 = vmul.f32 %v1768_v63, %v5122_v44 }
 0x1e9   : > { %2129 = vmatmul.bf16.gmra.mxu1 %v1847_v31  ;;  %v1158_v60 = vadd.f32 %v5367_v35, %v5365_v16  ;;  %v1798_v37 = vmul.f32 %v1723_v40, %v5810_v53  ;;  %v1832_v58 = vmul.f32 %v1800_v4, %v1062_v2  ;;  %v1799_v50 = vmul.f32 %v1738_v57, %v5813_v39 }
 0x1ea   : > { %2227 = vmatmul.bf16.gmra.mxu3 %v1847_v31  ;;  %v1833_v46 = vmul.f32 %v1801_v56, %v1160_v55 }
 0x1eb   : > { %v1830_v13 = vmul.f32 %v1798_v37, %v1060_v49  ;;  %v1831_v62 = vmul.f32 %v1799_v50, %v1158_v60 }
 0x1ed   : > { %v1848_v30 = vpack.c.bf16 %v1832_v58, %v1830_v13  ;;  %v1849_v52 = vpack.c.bf16 %v1833_v46, %v1831_v62 }
 0x1f8   : > { %2085 = vmatmul.bf16.gmra.mxu0 %v1848_v30  ;;  %2183 = vmatmul.bf16.gmra.mxu2 %v1848_v30 }
 0x1f9   : > { %2134 = vmatmul.bf16.gmra.mxu1 %v1849_v52 }
 0x1fa   : > { %2232 = vmatmul.bf16.gmra.mxu3 %v1849_v52 }
 0x205   : > { %v2051_v5 = vpop.f32.mrf.mxu0 }
 0x206   : > { %v2100_v47 = vpop.f32.mrf.mxu1 }
 0x207   : > { %v5435_v44 = vadd.f32 %v2100_v47, %v2051_v5 }
 0x20b   : > { %v2149_v28 = vpop.f32.mrf.mxu2 }
 0x20d   : > { %v2198_v43 = vpop.f32.mrf.mxu3  ;;  %v2053_v16 = vpop.f32.mrf.mxu0 }
 0x20e   : > { %v5437_v53 = vadd.f32 %v2198_v43, %v2149_v28  ;;  %v2102_v35 = vpop.f32.mrf.mxu1 }
 0x20f   : > { %v5439_v39 = vadd.f32 %v2102_v35, %v2053_v16 }
 0x213   : > { %v2151_v14 = vpop.f32.mrf.mxu2 }
 0x215   : > { %v2200_v11 = vpop.f32.mrf.mxu3  ;;  %v2056_v18 = vpop.f32.mrf.mxu0 }
 0x216   : > { %v5441_v61 = vadd.f32 %v2200_v11, %v2151_v14  ;;  %v2105_v15 = vpop.f32.mrf.mxu1 }
 0x217   : > { %v5443_v23 = vadd.f32 %v2105_v15, %v2056_v18 }
 0x21b   : > { %v2154_v59 = vpop.f32.mrf.mxu2 }
 0x21d   : > { %v2203_v8 = vpop.f32.mrf.mxu3  ;;  %v2058_v25 = vpop.f32.mrf.mxu0 }
 0x21e   : > { %v5445_v27 = vadd.f32 %v2203_v8, %v2154_v59  ;;  %v2107_v33 = vpop.f32.mrf.mxu1 }
 0x21f   : > { %v5447_v6 = vadd.f32 %v2107_v33, %v2058_v25 }
 0x223   : > { %v2156_v31 = vpop.f32.mrf.mxu2 }
 0x225   : > { %v2205_v7 = vpop.f32.mrf.mxu3  ;;  %v2061_v45 = vpop.f32.mrf.mxu0 }
 0x226   : > { %v5449_v10 = vadd.f32 %v2205_v7, %v2156_v31  ;;  %v2110_v22 = vpop.f32.mrf.mxu1 }
 0x227   : > { %v5451_v9 = vadd.f32 %v2110_v22, %v2061_v45 }
 0x22b   : > { %v2159_v19 = vpop.f32.mrf.mxu2 }
 0x22d   : > { %v2208_v32 = vpop.f32.mrf.mxu3  ;;  %v2063_v0 = vpop.f32.mrf.mxu0 }
 0x22e   : > { %v5453_v12 = vadd.f32 %v2208_v32, %v2159_v19  ;;  %v2112_v1 = vpop.f32.mrf.mxu1 }
 0x22f   : > { %v5455_v34 = vadd.f32 %v2112_v1, %v2063_v0 }
 0x233   : > { %v2161_v24 = vpop.f32.mrf.mxu2 }
 0x235   : > { %v2210_v38 = vpop.f32.mrf.mxu3  ;;  %v2066_v42 = vpop.f32.mrf.mxu0 }
 0x236   : > { %v5457_v41 = vadd.f32 %v2210_v38, %v2161_v24  ;;  %v2115_v29 = vpop.f32.mrf.mxu1 }
 0x237   : > { %v5459_v21 = vadd.f32 %v2115_v29, %v2066_v42 }
 0x23b   : > { %v2164_v20 = vpop.f32.mrf.mxu2 }
 0x23d   : > { %v2213_v54 = vpop.f32.mrf.mxu3  ;;  %v2068_v36 = vpop.f32.mrf.mxu0 }
 0x23e   : > { %v5461_v48 = vadd.f32 %v2213_v54, %v2164_v20  ;;  %v2117_v51 = vpop.f32.mrf.mxu1 }
 0x23f   : > { %v5463_v17 = vadd.f32 %v2117_v51, %v2068_v36 }
 0x243   : > { %v2166_v3 = vpop.f32.mrf.mxu2 }
 0x245   : > { %v2215_v26 = vpop.f32.mrf.mxu3  ;;  %v2071_v63 = vpop.f32.mrf.mxu0 }
 0x246   : > { %v5465_v2 = vadd.f32 %v2215_v26, %v2166_v3  ;;  %v2120_v40 = vpop.f32.mrf.mxu1 }
 0x247   : > { %v5467_v55 = vadd.f32 %v2120_v40, %v2071_v63 }
 0x24b   : > { %v2169_v57 = vpop.f32.mrf.mxu2 }
 0x24d   : > { %v2218_v4 = vpop.f32.mrf.mxu3  ;;  %v2073_v49 = vpop.f32.mrf.mxu0 }
 0x24e   : > { %v5469_v56 = vadd.f32 %v2218_v4, %v2169_v57  ;;  %v2122_v60 = vpop.f32.mrf.mxu1 }
 0x24f   : > { %v5471_v37 = vadd.f32 %v2122_v60, %v2073_v49 }
 0x253   : > { %v2171_v58 = vpop.f32.mrf.mxu2 }
 0x255   : > { %v2220_v50 = vpop.f32.mrf.mxu3  ;;  %v2076_v46 = vpop.f32.mrf.mxu0 }
 0x256   : > { %v5473_v13 = vadd.f32 %v2220_v50, %v2171_v58  ;;  %v2125_v62 = vpop.f32.mrf.mxu1 }
 0x257   : > { %v5475_v30 = vadd.f32 %v2125_v62, %v2076_v46 }
 0x25b   : > { %v2174_v52 = vpop.f32.mrf.mxu2 }
 0x25d   : > { %v2223_v5 = vpop.f32.mrf.mxu3  ;;  %v2078_v47 = vpop.f32.mrf.mxu0 }
 0x25e   : > { %v5477_v28 = vadd.f32 %v2223_v5, %v2174_v52  ;;  %v2127_v43 = vpop.f32.mrf.mxu1 }
 0x25f   : > { %v5479_v16 = vadd.f32 %v2127_v43, %v2078_v47 }
 0x263   : > { %v2176_v35 = vpop.f32.mrf.mxu2 }
 0x265   : > { %v2225_v14 = vpop.f32.mrf.mxu3  ;;  %v2081_v11 = vpop.f32.mrf.mxu0 }
 0x266   : > { %v5481_v18 = vadd.f32 %v2225_v14, %v2176_v35  ;;  %v2130_v15 = vpop.f32.mrf.mxu1 }
 0x267   : > { %v5483_v59 = vadd.f32 %v2130_v15, %v2081_v11 }
 0x26b   : > { %v2179_v8 = vpop.f32.mrf.mxu2 }
 0x26d   : > { %v2228_v25 = vpop.f32.mrf.mxu3  ;;  %v2083_v33 = vpop.f32.mrf.mxu0 }
 0x26e   : > { %v5485_v31 = vadd.f32 %v2228_v25, %v2179_v8  ;;  %v2132_v7 = vpop.f32.mrf.mxu1 }
 0x26f   : > { %v5487_v45 = vadd.f32 %v2132_v7, %v2083_v33 }
 0x273   : > { %v2181_v22 = vpop.f32.mrf.mxu2 }
 0x275   : > { %v2230_v19 = vpop.f32.mrf.mxu3  ;;  %v2086_v32 = vpop.f32.mrf.mxu0 }
 0x276   : > { %v5489_v0 = vadd.f32 %v2230_v19, %v2181_v22  ;;  %v2135_v1 = vpop.f32.mrf.mxu1 }
 0x277   : > { %v5491_v24 = vadd.f32 %v2135_v1, %v2086_v32 }
 0x27b   : > { %v2184_v38 = vpop.f32.mrf.mxu2 }
 0x27d   : > { %v2233_v42 = vpop.f32.mrf.mxu3  ;;  %v2088_v20 = vpop.f32.mrf.mxu0 }
 0x27e   : > { %v5493_v29 = vadd.f32 %v2233_v42, %v2184_v38  ;;  %v2137_v54 = vpop.f32.mrf.mxu1 }
 0x27f   : > { %v5495_v36 = vadd.f32 %v2137_v54, %v2088_v20 }
 0x282   : > { %2241 = sbr.rel (%p3086_p5) target bundleno = 679 (0x2a7), region = 48 }
 0x283   : > { %v2186_v51 = vpop.f32.mrf.mxu2 }
 0x285   : > { %v2235_v3 = vpop.f32.mrf.mxu3 }
 0x286   : > { %v5497_v26 = vadd.f32 %v2235_v3, %v2186_v51 }
 0x287   : > { %2242 = vst [vmem:[#allocation2 + $0xb0] sm:$0xff] %v5435_v44 }
 0x288   : > { %2243 = vst [vmem:[#allocation2] sm:$0xff] %v5437_v53 }
 0x289   : > { %2244 = vst [vmem:[#allocation2 + $0xd8] sm:$0xff] %v5439_v39 }
 0x28a   : > { %2245 = vst [vmem:[#allocation2 + $0x18] sm:$0xff] %v5441_v61 }
 0x28b   : > { %2246 = vst [vmem:[#allocation2 + $0x50] sm:$0xff] %v5443_v23 }
 0x28c   : > { %2247 = vst [vmem:[#allocation2 + $0x68] sm:$0xff] %v5445_v27 }
 0x28d   : > { %2248 = vst [vmem:[#allocation2 + $0x30] sm:$0xff] %v5447_v6 }
 0x28e   : > { %2249 = vst [vmem:[#allocation2 + $0x48] sm:$0xff] %v5449_v10 }
 0x28f   : > { %2250 = vst [vmem:[#allocation2 + $0x80] sm:$0xff] %v5451_v9 }
 0x290   : > { %2251 = vst [vmem:[#allocation2 + $0x88] sm:$0xff] %v5453_v12 }
 0x291   : > { %2252 = vst [vmem:[#allocation2 + $0xe8] sm:$0xff] %v5455_v34 }
 0x292   : > { %2253 = vst [vmem:[#allocation2 + $0xb8] sm:$0xff] %v5457_v41 }
 0x293   : > { %2254 = vst [vmem:[#allocation2 + $0x60] sm:$0xff] %v5459_v21 }
 0x294   : > { %2255 = vst [vmem:[#allocation2 + $0xf0] sm:$0xff] %v5461_v48 }
 0x295   : > { %2256 = vst [vmem:[#allocation2 + $0x8] sm:$0xff] %v5463_v17 }
 0x296   : > { %2257 = vst [vmem:[#allocation2 + $0x78] sm:$0xff] %v5465_v2 }
 0x297   : > { %2258 = vst [vmem:[#allocation2 + $0x38] sm:$0xff] %v5467_v55 }
 0x298   : > { %2259 = vst [vmem:[#allocation2 + $0x58] sm:$0xff] %v5469_v56 }
 0x299   : > { %2260 = vst [vmem:[#allocation2 + $0x40] sm:$0xff] %v5471_v37 }
 0x29a   : > { %2261 = vst [vmem:[#allocation2 + $0xc8] sm:$0xff] %v5473_v13 }
 0x29b   : > { %2262 = vst [vmem:[#allocation2 + $0xe0] sm:$0xff] %v5475_v30 }
 0x29c   : > { %2263 = vst [vmem:[#allocation2 + $0x90] sm:$0xff] %v5477_v28 }
 0x29d   : > { %2264 = vst [vmem:[#allocation2 + $0x70] sm:$0xff] %v5479_v16 }
 0x29e   : > { %2265 = vst [vmem:[#allocation2 + $0xc0] sm:$0xff] %v5481_v18 }
 0x29f   : > { %2266 = vst [vmem:[#allocation2 + $0xa8] sm:$0xff] %v5483_v59 }
 0x2a0   : > { %2267 = vst [vmem:[#allocation2 + $0xd0] sm:$0xff] %v5485_v31 }
 0x2a1   : > { %2268 = vst [vmem:[#allocation2 + $0x10] sm:$0xff] %v5487_v45 }
 0x2a2   : > { %2269 = vst [vmem:[#allocation2 + $0x28] sm:$0xff] %v5489_v0 }
 0x2a3   : > { %2270 = vst [vmem:[#allocation2 + $0xa0] sm:$0xff] %v5491_v24 }
 0x2a4   : > { %2271 = vst [vmem:[#allocation2 + $0xf8] sm:$0xff] %v5493_v29 }
 0x2a5   : > { %2272 = vst [vmem:[#allocation2 + $0x20] sm:$0xff] %v5495_v36 }
 0x2a6   : > { %2273 = vst [vmem:[#allocation2 + $0x98] sm:$0xff] %v5497_v26 }
 0x2a7 PF: > { %p3087_p7 = scmp.le.s32.totalorder %s3661_s18, 0 }
 0x2a9   : > { %2277 = sbr.rel (%p3087_p7) target bundleno = 721 (0x2d1), region = 52 }
 0x2ae   : > { %v2278_v63 = vld [vmem:[#allocation2 + $0xb0] sm:$0xff]  ;;  %v2279_v40 = vld [vmem:[#allocation2] sm:$0xff]  ;;  %v2280_v57 = vld [vmem:[#allocation2 + $0xd8] sm:$0xff] }
 0x2af   : > { %v2310_v4 = vadd.f32 %v2278_v63, %v5435_v44  ;;  %v2311_v49 = vadd.f32 %v2279_v40, %v5437_v53  ;;  %v2312_v60 = vadd.f32 %v2280_v57, %v5439_v39  ;;  %v2281_v58 = vld [vmem:[#allocation2 + $0x18] sm:$0xff]  ;;  %v2282_v50 = vld [vmem:[#allocation2 + $0x50] sm:$0xff]  ;;  %v2283_v46 = vld [vmem:[#allocation2 + $0x68] sm:$0xff] }
 0x2b0   : > { %v2313_v62 = vadd.f32 %v2281_v58, %v5441_v61  ;;  %v2284_v52 = vld [vmem:[#allocation2 + $0x30] sm:$0xff]  ;;  %v2314_v5 = vadd.f32 %v2282_v50, %v5443_v23  ;;  %v2285_v47 = vld [vmem:[#allocation2 + $0x48] sm:$0xff]  ;;  %v2315_v43 = vadd.f32 %v2283_v46, %v5445_v27  ;;  %v2286_v35 = vld [vmem:[#allocation2 + $0x80] sm:$0xff] }
 0x2b1   : > { %2342 = vst [vmem:[#allocation2 + $0xb0] sm:$0xff] %v2310_v4  ;;  %v2316_v44 = vadd.f32 %v2284_v52, %v5447_v6  ;;  %v2287_v53 = vld [vmem:[#allocation2 + $0x88] sm:$0xff]  ;;  %v2317_v39 = vadd.f32 %v2285_v47, %v5449_v10  ;;  %v2318_v61 = vadd.f32 %v2286_v35, %v5451_v9  ;;  %v2289_v11 = vld [vmem:[#allocation2 + $0xb8] sm:$0xff]  ;;  %v2290_v15 = vld [vmem:[#allocation2 + $0x60] sm:$0xff] }
 0x2b2   : > { %2343 = vst [vmem:[#allocation2] sm:$0xff] %v2311_v49  ;;  %v2288_v14 = vld [vmem:[#allocation2 + $0xe8] sm:$0xff]  ;;  %v2319_v23 = vadd.f32 %v2287_v53, %v5453_v12  ;;  %v2291_v8 = vld [vmem:[#allocation2 + $0xf0] sm:$0xff]  ;;  %v2321_v6 = vadd.f32 %v2289_v11, %v5457_v41  ;;  %v2322_v10 = vadd.f32 %v2290_v15, %v5459_v21  ;;  %v2293_v33 = vld [vmem:[#allocation2 + $0x78] sm:$0xff] }
 0x2b3   : > { %2344 = vst [vmem:[#allocation2 + $0xd8] sm:$0xff] %v2312_v60  ;;  %v2320_v27 = vadd.f32 %v2288_v14, %v5455_v34  ;;  %v2292_v25 = vld [vmem:[#allocation2 + $0x8] sm:$0xff]  ;;  %v2323_v9 = vadd.f32 %v2291_v8, %v5461_v48  ;;  %v2294_v7 = vld [vmem:[#allocation2 + $0x38] sm:$0xff]  ;;  %v2325_v34 = vadd.f32 %v2293_v33, %v5465_v2  ;;  %v2296_v19 = vld [vmem:[#allocation2 + $0x40] sm:$0xff] }
 0x2b4   : > { %2345 = vst [vmem:[#allocation2 + $0x18] sm:$0xff] %v2313_v62  ;;  %v2324_v12 = vadd.f32 %v2292_v25, %v5463_v17  ;;  %v2295_v22 = vld [vmem:[#allocation2 + $0x58] sm:$0xff]  ;;  %v2326_v41 = vadd.f32 %v2294_v7, %v5467_v55  ;;  %v2297_v32 = vld [vmem:[#allocation2 + $0xc8] sm:$0xff]  ;;  %v2298_v1 = vld [vmem:[#allocation2 + $0xe0] sm:$0xff]  ;;  %v2328_v48 = vadd.f32 %v2296_v19, %v5471_v37 }
 0x2b5   : > { %2346 = vst [vmem:[#allocation2 + $0x50] sm:$0xff] %v2314_v5  ;;  %v2327_v21 = vadd.f32 %v2295_v22, %v5469_v56  ;;  %v2299_v38 = vld [vmem:[#allocation2 + $0x90] sm:$0xff]  ;;  %v2329_v17 = vadd.f32 %v2297_v32, %v5473_v13  ;;  %v2330_v2 = vadd.f32 %v2298_v1, %v5475_v30  ;;  %v2301_v20 = vld [vmem:[#allocation2 + $0xc0] sm:$0xff]  ;;  %v2302_v54 = vld [vmem:[#allocation2 + $0xa8] sm:$0xff] }
 0x2b6   : > { %2347 = vst [vmem:[#allocation2 + $0x68] sm:$0xff] %v2315_v43  ;;  %v2300_v42 = vld [vmem:[#allocation2 + $0x70] sm:$0xff]  ;;  %v2331_v55 = vadd.f32 %v2299_v38, %v5477_v28  ;;  %v2333_v37 = vadd.f32 %v2301_v20, %v5481_v18  ;;  %v2334_v13 = vadd.f32 %v2302_v54, %v5483_v59  ;;  %v2305_v63 = vld [vmem:[#allocation2 + $0x28] sm:$0xff]  ;;  %v2306_v40 = vld [vmem:[#allocation2 + $0xa0] sm:$0xff] }
 0x2b7   : > { %2348 = vst [vmem:[#allocation2 + $0x30] sm:$0xff] %v2316_v44  ;;  %v2332_v56 = vadd.f32 %v2300_v42, %v5479_v16  ;;  %v2303_v51 = vld [vmem:[#allocation2 + $0xd0] sm:$0xff]  ;;  %v2307_v57 = vld [vmem:[#allocation2 + $0xf8] sm:$0xff]  ;;  %v2337_v16 = vadd.f32 %v2305_v63, %v5489_v0  ;;  %v2308_v4 = vld [vmem:[#allocation2 + $0x20] sm:$0xff]  ;;  %v2338_v18 = vadd.f32 %v2306_v40, %v5491_v24 }
 0x2b8   : > { %2349 = vst [vmem:[#allocation2 + $0x48] sm:$0xff] %v2317_v39  ;;  %v2304_v3 = vld [vmem:[#allocation2 + $0x10] sm:$0xff]  ;;  %v2335_v30 = vadd.f32 %v2303_v51, %v5485_v31  ;;  %v2309_v49 = vld [vmem:[#allocation2 + $0x98] sm:$0xff]  ;;  %v2339_v59 = vadd.f32 %v2307_v57, %v5493_v29  ;;  %v2340_v60 = vadd.f32 %v2308_v4, %v5495_v36 }
 0x2b9   : > { %2350 = vst [vmem:[#allocation2 + $0x80] sm:$0xff] %v2318_v61  ;;  %v2336_v28 = vadd.f32 %v2304_v3, %v5487_v45  ;;  %v2341_v31 = vadd.f32 %v2309_v49, %v5497_v26 }
 0x2ba   : > { %2351 = vst [vmem:[#allocation2 + $0x88] sm:$0xff] %v2319_v23 }
 0x2bb   : > { %2352 = vst [vmem:[#allocation2 + $0xe8] sm:$0xff] %v2320_v27 }
 0x2bc   : > { %2353 = vst [vmem:[#allocation2 + $0xb8] sm:$0xff] %v2321_v6 }
 0x2bd   : > { %2354 = vst [vmem:[#allocation2 + $0x60] sm:$0xff] %v2322_v10 }
 0x2be   : > { %2355 = vst [vmem:[#allocation2 + $0xf0] sm:$0xff] %v2323_v9 }
 0x2bf   : > { %2356 = vst [vmem:[#allocation2 + $0x8] sm:$0xff] %v2324_v12 }
 0x2c0   : > { %2357 = vst [vmem:[#allocation2 + $0x78] sm:$0xff] %v2325_v34 }
 0x2c1   : > { %2358 = vst [vmem:[#allocation2 + $0x38] sm:$0xff] %v2326_v41 }
 0x2c2   : > { %2359 = vst [vmem:[#allocation2 + $0x58] sm:$0xff] %v2327_v21 }
 0x2c3   : > { %2360 = vst [vmem:[#allocation2 + $0x40] sm:$0xff] %v2328_v48 }
 0x2c4   : > { %2361 = vst [vmem:[#allocation2 + $0xc8] sm:$0xff] %v2329_v17 }
 0x2c5   : > { %2362 = vst [vmem:[#allocation2 + $0xe0] sm:$0xff] %v2330_v2 }
 0x2c6   : > { %2363 = vst [vmem:[#allocation2 + $0x90] sm:$0xff] %v2331_v55 }
 0x2c7   : > { %2364 = vst [vmem:[#allocation2 + $0x70] sm:$0xff] %v2332_v56 }
 0x2c8   : > { %2365 = vst [vmem:[#allocation2 + $0xc0] sm:$0xff] %v2333_v37 }
 0x2c9   : > { %2366 = vst [vmem:[#allocation2 + $0xa8] sm:$0xff] %v2334_v13 }
 0x2ca   : > { %2367 = vst [vmem:[#allocation2 + $0xd0] sm:$0xff] %v2335_v30 }
 0x2cb   : > { %2368 = vst [vmem:[#allocation2 + $0x10] sm:$0xff] %v2336_v28 }
 0x2cc   : > { %2369 = vst [vmem:[#allocation2 + $0x28] sm:$0xff] %v2337_v16 }
 0x2cd   : > { %2370 = vst [vmem:[#allocation2 + $0xa0] sm:$0xff] %v2338_v18 }
 0x2ce   : > { %2371 = vst [vmem:[#allocation2 + $0xf8] sm:$0xff] %v2339_v59 }
 0x2cf   : > { %2372 = vst [vmem:[#allocation2 + $0x20] sm:$0xff] %v2340_v60 }
 0x2d0   : > { %2373 = vst [vmem:[#allocation2 + $0x98] sm:$0xff] %v2341_v31 }
 0x2d1 PF: > { %p3088_p10 = scmp.ne.s32.totalorder %s3661_s18, 1 }
 0x2d3   : > { %2377 = sbr.rel (%p3088_p10) target bundleno = 747 (0x2eb), region = 56 }
 0x2d8   : > { %v2378_v45 = vld [vmem:[#allocation2 + $0xb0] sm:$0xff]  ;;  %v2379_v0 = vld [vmem:[#allocation2] sm:$0xff]  ;;  %v2380_v24 = vld [vmem:[#allocation2 + $0xd8] sm:$0xff] }
 0x2d9   : > { %v2410_v29 = vpack.c.bf16 %v2379_v0, %v2378_v45  ;;  %v2381_v58 = vld [vmem:[#allocation2 + $0x18] sm:$0xff]  ;;  %v2382_v50 = vld [vmem:[#allocation2 + $0x50] sm:$0xff]  ;;  %v2383_v36 = vld [vmem:[#allocation2 + $0x68] sm:$0xff] }
 0x2da   : > { %v2411_v46 = vpack.c.bf16 %v2381_v58, %v2380_v24  ;;  %v2412_v26 = vpack.c.bf16 %v2383_v36, %v2382_v50  ;;  %v2384_v62 = vld [vmem:[#allocation2 + $0x30] sm:$0xff]  ;;  %v2385_v52 = vld [vmem:[#allocation2 + $0x48] sm:$0xff]  ;;  %v2386_v5 = vld [vmem:[#allocation2 + $0x80] sm:$0xff] }
 0x2db   : > { %2426 = vst [vmem:[%s5501_s11] sm:$0xff] %v2410_v29  ;;  %v2413_v47 = vpack.c.bf16 %v2385_v52, %v2384_v62  ;;  %v2387_v43 = vld [vmem:[#allocation2 + $0x88] sm:$0xff]  ;;  %v2389_v44 = vld [vmem:[#allocation2 + $0xb8] sm:$0xff]  ;;  %v2390_v14 = vld [vmem:[#allocation2 + $0x60] sm:$0xff] }
 0x2dc   : > { %v2388_v35 = vld [vmem:[#allocation2 + $0xe8] sm:$0xff]  ;;  %2427 = vst [vmem:[%s5501_s11 + $0x8] sm:$0xff] %v2411_v46  ;;  %v2414_v53 = vpack.c.bf16 %v2387_v43, %v2386_v5  ;;  %v2391_v61 = vld [vmem:[#allocation2 + $0xf0] sm:$0xff]  ;;  %v2393_v15 = vld [vmem:[#allocation2 + $0x78] sm:$0xff] }
 0x2dd   : > { %v2415_v39 = vpack.c.bf16 %v2389_v44, %v2388_v35  ;;  %v2392_v11 = vld [vmem:[#allocation2 + $0x8] sm:$0xff]  ;;  %2428 = vst [vmem:[%s5501_s11 + $0x10] sm:$0xff] %v2412_v26  ;;  %v2416_v23 = vpack.c.bf16 %v2391_v61, %v2390_v14  ;;  %v2394_v27 = vld [vmem:[#allocation2 + $0x38] sm:$0xff]  ;;  %v2396_v25 = vld [vmem:[#allocation2 + $0x40] sm:$0xff] }
 0x2de   : > { %v2395_v8 = vld [vmem:[#allocation2 + $0x58] sm:$0xff]  ;;  %2429 = vst [vmem:[%s5501_s11 + $0x18] sm:$0xff] %v2413_v47  ;;  %v2417_v6 = vpack.c.bf16 %v2393_v15, %v2392_v11  ;;  %v2397_v10 = vld [vmem:[#allocation2 + $0xc8] sm:$0xff]  ;;  %v2398_v33 = vld [vmem:[#allocation2 + $0xe0] sm:$0xff] }
 0x2df   : > { %2430 = vst [vmem:[%s5501_s11 + $0x20] sm:$0xff] %v2414_v53  ;;  %v2418_v9 = vpack.c.bf16 %v2395_v8, %v2394_v27  ;;  %v2399_v7 = vld [vmem:[#allocation2 + $0x90] sm:$0xff]  ;;  %v2401_v22 = vld [vmem:[#allocation2 + $0xc0] sm:$0xff]  ;;  %v2419_v34 = vpack.c.bf16 %v2397_v10, %v2396_v25  ;;  %v2402_v19 = vld [vmem:[#allocation2 + $0xa8] sm:$0xff] }
 0x2e0   : > { %v2400_v12 = vld [vmem:[#allocation2 + $0x70] sm:$0xff]  ;;  %2431 = vst [vmem:[%s5501_s11 + $0x28] sm:$0xff] %v2415_v39  ;;  %v2420_v32 = vpack.c.bf16 %v2399_v7, %v2398_v33  ;;  %v2405_v1 = vld [vmem:[#allocation2 + $0x28] sm:$0xff]  ;;  %v2406_v38 = vld [vmem:[#allocation2 + $0xa0] sm:$0xff] }
 0x2e1   : > { %v2403_v41 = vld [vmem:[#allocation2 + $0xd0] sm:$0xff]  ;;  %2432 = vst [vmem:[%s5501_s11 + $0x30] sm:$0xff] %v2416_v23  ;;  %v2421_v48 = vpack.c.bf16 %v2401_v22, %v2400_v12  ;;  %v2407_v17 = vld [vmem:[#allocation2 + $0xf8] sm:$0xff]  ;;  %v2408_v2 = vld [vmem:[#allocation2 + $0x20] sm:$0xff] }
 0x2e2   : > { %v2404_v21 = vld [vmem:[#allocation2 + $0x10] sm:$0xff]  ;;  %2433 = vst [vmem:[%s5501_s11 + $0x38] sm:$0xff] %v2417_v6  ;;  %v2422_v42 = vpack.c.bf16 %v2403_v41, %v2402_v19  ;;  %v2409_v20 = vld [vmem:[#allocation2 + $0x98] sm:$0xff]  ;;  %v2424_v54 = vpack.c.bf16 %v2407_v17, %v2406_v38 }
 0x2e3   : > { %2434 = vst [vmem:[%s5501_s11 + $0x40] sm:$0xff] %v2418_v9  ;;  %v2423_v55 = vpack.c.bf16 %v2405_v1, %v2404_v21  ;;  %v2425_v56 = vpack.c.bf16 %v2409_v20, %v2408_v2 }
 0x2e4   : > { %2435 = vst [vmem:[%s5501_s11 + $0x48] sm:$0xff] %v2419_v34 }
 0x2e5   : > { %2436 = vst [vmem:[%s5501_s11 + $0x50] sm:$0xff] %v2420_v32 }
 0x2e6   : > { %2437 = vst [vmem:[%s5501_s11 + $0x58] sm:$0xff] %v2421_v48 }
 0x2e7   : > { %2438 = vst [vmem:[%s5501_s11 + $0x60] sm:$0xff] %v2422_v42 }
 0x2e8   : > { %2439 = vst [vmem:[%s5501_s11 + $0x68] sm:$0xff] %v2423_v55 }
 0x2e9   : > { %2440 = vst [vmem:[%s5501_s11 + $0x70] sm:$0xff] %v2424_v54 }
 0x2ea   : > { %2441 = vst [vmem:[%s5501_s11 + $0x78] sm:$0xff] %v2425_v56 }
 0x2eb PF: > { %s5840_s18 = sld [smem:[#allocation15_spill]]  ;;  %s2456_s30 = sshll.u32 %s5501_s11, 4  ;;  %s2457_s30 = int_to_ptr.vmem [resolvable:$true] %s2456_s30 }
 0x2ec   : > { %s5842_s10 = sld [smem:[#allocation52_spill]]  ;;  %s2443_s29 = scalar_lea.sflag [#allocation5], %s3889_s9 }
 0x2f1   : > { %s3213_s6 = sshll.u32 %s5840_s18, 7 }
 0x2f2   : > { %s2455_s4 = scalar_lea.hbm %s5842_s10, %s3213_s6  ;;  %s3571_s21 = scalar_lea.hbm %s5842_s10, 256 }
 0x2f3   : > { %s2458_s3 = sshll.u32 %s2455_s4, 4  ;;  %s2459_s3 = int_to_ptr.hbm [resolvable:$true] %s2458_s3 }
 0x2f4   : > { %s3565_s23 = sshra.s32 %s2459_s3, 4  ;;  %s3566_s23 = int_to_ptr.hbm [resolvable:$true] %s3565_s23 }
 0x2f5   : > { %s3567_s8 = scalar_lea.hbm %s3566_s23, 128  ;;  %p3572_p6 = scmp.lt.s32.totalorder %s3566_s23, %s5842_s10 }
 0x2f6   : > { %p3568_p12 = scmp.ne.s32.totalorder %s3566_s23, %s3567_s8  ;;  %p3573_p8 = scmp.lt.s32.totalorder %s3571_s21, %s3567_s8 }
 0x2f8   : > { %p3569_p2 = pnand %p3568_p12, %p3854_p0  ;;  %p3574_p1 = por %p3573_p8, %p3572_p6 }
 0x2fa   : > { %p3570_p4 = pneg %p3569_p2 }
 0x2fc   : > { %p3575_p9 = pnand %p3574_p1, %p3570_p4 }
 0x2fe   : > { %3578 = shalt.err (!%p3575_p9)
}
 0x2ff   : > { %s3684_s9 = smov 128   ;;  %s3685_s25 = smov 8  }
 0x300   : > { %3220 = dma.vmem_to_hbm [thread:$0]  (%p3854_p0), %s2457_s30, 2048, %s2459_s3, %s2443_s29, %s3684_s9, %s3684_s9, %s3685_s25  }
 0x301 PF: > { %s5843_s27 = sld [smem:[#allocation13_spill]]  ;;  %p3237_p13 = scmp.ge.s32.totalorder %s3677_s22, 2 }
 0x303   : > { %p3233_p11 = pnand %p3237_p13, %p3866_p3 }
 0x305   : > { %p3234_p5 = pneg %p3233_p11 }
 0x307   : > { %s2473_s7 = sand.u32 1, %s5843_s27  }
 0x308   : > { %s2474_s24 = scalar_lea.sflag [#allocation5], %s2473_s7 }
 0x309   : > { %3632 = dma.done.wait (%p3234_p5), %s2474_s24, 2048  }
 0x30a   : > { %3634 = vsyncadd (%p3234_p5), %s2474_s24, 4294965248  ;;  %s22_s22 = sadd.s32 1, %s3677_s22   ;;  %s5845_s11 = sld [smem:[#allocation18_spill]] }
 0x30b   : > { %p19_p7 = scmp.ge.s32.totalorder %s22_s22, 6   ;;  %s5846_s18 = sld [smem:[#allocation14_spill]] }
 0x30c   : > { %s5847_s17 = sld [smem:[#allocation21_spill]]  ;;  %s5851_s12 = smov %s3641_s13 }
 0x30d   : > { %s5848_s19 = sld [smem:[#allocation16_spill]]  ;;  %s5852_s13 = smov %s3645_s14 }
 0x30e   : > { %s5849_s5 = sld [smem:[#allocation17_spill]]  ;;  %s5854_s15 = smov %s3653_s16 }
 0x30f   : > { %s5850_s21 = sld [smem:[#allocation19_spill]] }
 0x310   : > { %s5853_s14 = smov %s5845_s11  ;;  %21 = sbr.rel (!%p19_p7) target bundleno = 14 (0xe), region = 113 }
 0x311   : > { %s5855_s16 = smov %s5846_s18  ;;  %s5856_s18 = smov %s3669_s20 }
 0x314   : > { %s5857_s20 = smov %s5849_s5 }
 0x315   :  { %2480 = vsyncpa [#allocation4], 1 }
 0x316   :  { %2482 = vsyncpa [#allocation4 + $0x1], 1 }
 0x317   :  { %2483 = vsyncpa [#allocation7], 1 }
 0x318   :  { %2485 = vsyncpa [#allocation7 + $0x1], 1 }
 0x319   :  { %2486 = vsyncpa [#allocation5], 1 }
 0x31a   :  { %2488 = vsyncpa [#allocation5 + $0x1], 1 }

</bundles_post_ra>
